<compile_context>
chip_gen: v7x
topology: tpu7x:2x2x1
jax: 0.10.0
libtpu: 0.0.40
codegen_flags: <defaults>
</compile_context>

<pallas_src>
import functools
import math

import jax
import jax.numpy as jnp
from jax import lax
from jax.experimental import pallas as pl
from jax.experimental.pallas import tpu as pltpu

_LANE = 128
_NOUT = 15  # 3 anchors * 5 values


def _round_up(x, m):
    return -(-x // m) * m


def _pick_tile(H, W, max_pixels=2048):
    """Pick (th, Wp): th | H, Wp >= W, (th*Wp) % 128 == 0, Wp % 8 == 0.

    Preference order: minimal width padding, then >=2 row tiles (feeds both v7x
    TensorCores even at batch 1), then the largest pixel tile within budget.
    """
    best = None
    for th in range(1, H + 1):
        if H % th:
            continue
        align = max(_LANE // math.gcd(th, _LANE), 8)
        Wp = _round_up(W, align)
        px = th * Wp
        if px > max_pixels:
            continue
        key = (Wp - W, 0 if H // th >= 2 else 1, -px)
        if best is None or key < best[0]:
            best = (key, th, Wp)
    if best is None:  # pathological fallback: one row per grid step
        return 1, _round_up(W, _LANE)
    return best[1], best[2]


def _scaled_pred_kernel(x_ref, w1_ref, b1_ref, w2t_ref, b2_ref, o_ref, patch_ref,
                        *, th, Wp, Cin_p):
    # x_ref    : (1, H+2, Wp+2, Cin_p) f32  zero-padded input (one image, resident)
    # w1_ref   : (9*Cin_p, Cmid_p)     bf16 3x3 weights, tap-major, BN scale folded
    # b1_ref   : (1, Cmid_p)           f32  folded BN bias
    # w2t_ref  : (15, Cmid_p)          bf16 1x1 weights (output-channel major)
    # b2_ref   : (15, 1)               f32  1x1 conv bias
    # o_ref    : (1, 15, th*Wp)        f32  channel-major output slab for this row tile
    # patch_ref: (th*Wp, 9*Cin_p)      bf16 persistent im2col scratch
    r = pl.program_id(1)
    row0 = pl.multiple_of(r * th, th)  # top padded row of this tile

    # im2col straight into the bf16 scratch: column block k = tap (dy*3 + dx).
    # Cast to bf16 BEFORE the reshape so the copy traffic is half-width.
    for k in range(9):
        dy, dx = divmod(k, 3)
        tap = x_ref[0, pl.ds(row0 + dy, th), pl.ds(dx, Wp), :]          # (th, Wp, Cin_p)
        patch_ref[:, k * Cin_p:(k + 1) * Cin_p] = (
            tap.astype(jnp.bfloat16).reshape(th * Wp, Cin_p))

    # conv1 (3x3, BN scale pre-folded): one MXU matmul, f32 accumulation.
    acc = jnp.dot(patch_ref[...], w1_ref[...],
                  preferred_element_type=jnp.float32)                   # (th*Wp, Cmid_p)

    # Folded-BN bias + LeakyReLU(0.1) on the VPU (lane-dense Cmid_p), then cast to bf16
    # BEFORE the second matmul so no f32 relayout is needed.
    y = acc + b1_ref[...]
    y = jnp.where(y > 0.0, y, 0.1 * y).astype(jnp.bfloat16)             # (th*Wp, Cmid_p)

    # conv2 (1x1) as an NT contraction (no explicit y.T materialization); the result
    # stays channel-major (15, th*Wp) so the store is lane-dense.
    out = lax.dot_general(w2t_ref[...], y,
                          dimension_numbers=(((1,), (1,)), ((), ())),
                          preferred_element_type=jnp.float32)            # (15, th*Wp)
    out = out + b2_ref[...]
    o_ref[...] = out.reshape(1, _NOUT, th * Wp).astype(o_ref.dtype)


def scaled_prediction(x_nchw, params, *, max_pixels=2048):
    """Forward pass of ScaledPrediction. x_nchw: (N, C, H, W) float32."""
    w1, bn_scale, bn_bias, w2, b2 = params
    N, C, H, W = x_nchw.shape
    Cmid = w1.shape[3]
    assert w1.shape == (3, 3, C, Cmid) and w2.shape == (Cmid, _NOUT)

    Cin_p = _round_up(C, _LANE)
    Cmid_p = _round_up(Cmid, _LANE)
    th, Wp = _pick_tile(H, W, max_pixels=max_pixels)
    R = H // th

    # ---- host-side weight prep (fold BN scale, pad to lane multiples, cast bf16) ----
    w1s = (w1 * bn_scale).astype(jnp.float32)                            # (3,3,C,Cmid)
    w1s = jnp.pad(w1s, ((0, 0), (0, 0), (0, Cin_p - C), (0, Cmid_p - Cmid)))
    w1s = w1s.reshape(9 * Cin_p, Cmid_p).astype(jnp.bfloat16)            # tap-major rows
    b1 = jnp.pad(bn_bias, (0, Cmid_p - Cmid)).reshape(1, Cmid_p).astype(jnp.float32)
    w2t = jnp.pad(w2, ((0, Cmid_p - Cmid), (0, 0))).T.astype(jnp.bfloat16)   # (15, Cmid_p)
    b2c = b2.reshape(_NOUT, 1).astype(jnp.float32)

    # NCHW -> NHWC; 1-px halo + extra right columns so the flattened pixel tile th*Wp is
    # a lane multiple; channels zero-padded to a lane multiple (no-op for real YOLO Cin).
    x = jnp.transpose(x_nchw, (0, 2, 3, 1))
    x_pad = jnp.pad(x, ((0, 0), (1, 1), (1, 1 + Wp - W), (0, Cin_p - C)))

    flops = 2 * N * H * Wp * (9 * C * Cmid + Cmid * _NOUT)
    bytes_accessed = (x_pad.size * 4 + w1s.size * 2 + w2t.size * 2
                      + b1.size * 4 + b2c.size * 4 + N * _NOUT * H * Wp * 4)

    kernel = functools.partial(_scaled_pred_kernel, th=th, Wp=Wp, Cin_p=Cin_p)

    out_cmaj = pl.pallas_call(
        kernel,
        out_shape=jax.ShapeDtypeStruct((N, _NOUT, H * Wp), jnp.float32),
        grid_spec=pltpu.PrefetchScalarGridSpec(
            num_scalar_prefetch=0,
            grid=(N, R),
            in_specs=[
                # Full padded image resident across the row tiles of one image.
                pl.BlockSpec((1, H + 2, Wp + 2, Cin_p), lambda n, r: (n, 0, 0, 0)),
                pl.BlockSpec((9 * Cin_p, Cmid_p), lambda n, r: (0, 0)),
                pl.BlockSpec((1, Cmid_p), lambda n, r: (0, 0)),
                pl.BlockSpec((_NOUT, Cmid_p), lambda n, r: (0, 0)),
                pl.BlockSpec((_NOUT, 1), lambda n, r: (0, 0)),
            ],
            out_specs=pl.BlockSpec((1, _NOUT, th * Wp), lambda n, r: (n, 0, r)),
            scratch_shapes=[pltpu.VMEM((th * Wp, 9 * Cin_p), jnp.bfloat16)],
        ),
        compiler_params=pltpu.CompilerParams(
            dimension_semantics=("parallel", "parallel"),
            vmem_limit_bytes=64 * 1024 * 1024),
        cost_estimate=pl.CostEstimate(
            flops=flops, transcendentals=0, bytes_accessed=bytes_accessed),
    )(x_pad, w1s, b1, w2t, b2c)

    # Channel-major (N, 15, H*Wp) -> exactly torch's reshape + permute, then crop pad.
    out = out_cmaj.reshape(N, 3, 5, H, Wp).transpose(0, 1, 3, 4, 2)      # (N,3,H,Wp,5)
    return out[:, :, :, :W, :]


def init_params(key, in_size):
    """Deterministic synthetic parameters matching the PyTorch module shapes."""
    c_in = in_size
    c_mid = in_size * 2
    k1, k2, k3, k4, k5 = jax.random.split(key, 5)
    # Conv2d(C, 2C, 3) weight: torch (2C, C, 3, 3) -> HWIO (3, 3, C, 2C)
    w1 = jax.random.normal(k1, (3, 3, c_in, c_mid), jnp.float32) * 0.1
    # BatchNorm2d(2C) folded at inference: scale = gamma/sqrt(var+eps), bias = beta - mean*scale
    gamma = 1.0 + 0.05 * jax.random.normal(k2, (c_mid,), jnp.float32)
    beta = 0.05 * jax.random.normal(k3, (c_mid,), jnp.float32)
    running_mean = jnp.zeros((c_mid,), jnp.float32)
    running_var = jnp.ones((c_mid,), jnp.float32)
    eps = 1e-5
    bn_scale = gamma / jnp.sqrt(running_var + eps)
    bn_bias = beta - running_mean * bn_scale
    # Conv2d(2C, 15, 1) weight: torch (15, 2C, 1, 1) -> (2C, 15); bias (15,)
    w2 = jax.random.normal(k4, (c_mid, _NOUT), jnp.float32) * 0.1
    b2 = 0.05 * jax.random.normal(k5, (_NOUT,), jnp.float32)
    return (w1, bn_scale, bn_bias, w2, b2)


def reference(x_nchw, params):
    """Pure-JAX f32 reference (same semantics as the PyTorch module, folded BN)."""
    w1, bn_scale, bn_bias, w2, b2 = params
    x = jnp.transpose(x_nchw, (0, 2, 3, 1))
    y = jax.lax.conv_general_dilated(
        x, w1, window_strides=(1, 1), padding="SAME",
        dimension_numbers=("NHWC", "HWIO", "NHWC"))
    y = y * bn_scale + bn_bias
    y = jnp.where(y > 0, y, 0.1 * y)
    z = jnp.einsum("nhwc,co->nhwo", y, w2) + b2
    N, H, W, _ = z.shape
    return z.reshape(N, H, W, 3, 5).transpose(0, 3, 1, 2, 4)


if __name__ == "__main__":
    key = jax.random.PRNGKey(0)
    k_x, k_p = jax.random.split(key)

    N, C, H, W = 2, 4, 16, 16
    x = jax.random.normal(k_x, (N, C, H, W), jnp.float32)
    params = init_params(k_p, C)

    out = jax.block_until_ready(jax.jit(scaled_prediction)(x, params))
    ref = jax.block_until_ready(reference(x, params))

    assert out.shape == (N, 3, H, W, 5), out.shape
    # bf16 MXU operands -> compare against the f32 reference with a bf16-appropriate tol.
    max_err = float(jnp.max(jnp.abs(out - ref)))
    assert jnp.allclose(out, ref, atol=3e-2, rtol=3e-2), max_err
    print("KERNEL_OK")
</pallas_src>

<mosaic_0001>
module attributes {stable_mosaic.version = 11 : i64} {
  func.func @_scaled_pred_kernel(%arg0: i32, %arg1: i32, %arg2: memref<1x18x18x128xf32, #tpu.memory_space<vmem>>, %arg3: memref<1152x128xbf16, #tpu.memory_space<vmem>>, %arg4: memref<1x128xf32, #tpu.memory_space<vmem>>, %arg5: memref<15x128xbf16, #tpu.memory_space<vmem>>, %arg6: memref<15x1xf32, #tpu.memory_space<vmem>>, %arg7: memref<1x15x128xf32, #tpu.memory_space<vmem>>, %arg8: memref<128x1152xbf16, #tpu.memory_space<vmem>>) attributes {dimension_semantics = [#tpu.dimension_semantics<parallel>, #tpu.dimension_semantics<parallel>], iteration_bounds = array<i64: 2, 2>, scalar_prefetch = 0 : i64, scratch_operands = 1 : i64, tpu.core_type = #tpu.core_type<tc>, window_params = [{transform_indices = @transform_0, window_bounds = array<i64: 1, 18, 18, 128>}, {pipeline_mode = #tpu.pipeline_mode<synchronous>, transform_indices = @transform_1, window_bounds = array<i64: 1152, 128>}, {pipeline_mode = #tpu.pipeline_mode<synchronous>, transform_indices = @transform_2, window_bounds = array<i64: 1, 128>}, {pipeline_mode = #tpu.pipeline_mode<synchronous>, transform_indices = @transform_3, window_bounds = array<i64: 15, 128>}, {pipeline_mode = #tpu.pipeline_mode<synchronous>, transform_indices = @transform_4, window_bounds = array<i64: 15, 1>}, {transform_indices = @transform_5, window_bounds = array<i64: 1, 15, 128>}]} {
    %c8_i32 = arith.constant 8 : i32
    %0 = arith.muli %arg1, %c8_i32 : i32
    %1 = tpu.assume_multiple %0, 8 : i32
    %c0_i32 = arith.constant 0 : i32
    %2 = arith.addi %1, %c0_i32 : i32
    %c0 = arith.constant 0 : index
    %3 = arith.index_cast %2 : i32 to index
    %c0_0 = arith.constant 0 : index
    %c0_1 = arith.constant 0 : index
    %4 = vector.load %arg2[%c0, %3, %c0_0, %c0_1] : memref<1x18x18x128xf32, #tpu.memory_space<vmem>>, vector<1x8x16x128xf32>
    %5 = vector.shape_cast %4 : vector<1x8x16x128xf32> to vector<8x16x128xf32>
    %6 = arith.truncf %5 : vector<8x16x128xf32> to vector<8x16x128xbf16>
    %7 = vector.shape_cast %6 : vector<8x16x128xbf16> to vector<128x128xbf16>
    %c0_2 = arith.constant 0 : index
    %c0_3 = arith.constant 0 : index
    %8 = vector.load %arg8[%c0_2, %c0_3] : memref<128x1152xbf16, #tpu.memory_space<vmem>>, vector<128x128xbf16>
    tpu.vector_store %arg8[%c0_2, %c0_3], %7 {strides = array<i32>} : memref<128x1152xbf16, #tpu.memory_space<vmem>>, vector<128x128xbf16>,
    %c0_i32_4 = arith.constant 0 : i32
    %9 = arith.addi %1, %c0_i32_4 : i32
    %c0_5 = arith.constant 0 : index
    %10 = arith.index_cast %9 : i32 to index
    %c1 = arith.constant 1 : index
    %c0_6 = arith.constant 0 : index
    %11 = vector.load %arg2[%c0_5, %10, %c1, %c0_6] : memref<1x18x18x128xf32, #tpu.memory_space<vmem>>, vector<1x8x16x128xf32>
    %12 = vector.shape_cast %11 : vector<1x8x16x128xf32> to vector<8x16x128xf32>
    %13 = arith.truncf %12 : vector<8x16x128xf32> to vector<8x16x128xbf16>
    %14 = vector.shape_cast %13 : vector<8x16x128xbf16> to vector<128x128xbf16>
    %c0_7 = arith.constant 0 : index
    %c128 = arith.constant 128 : index
    %15 = vector.load %arg8[%c0_7, %c128] : memref<128x1152xbf16, #tpu.memory_space<vmem>>, vector<128x128xbf16>
    tpu.vector_store %arg8[%c0_7, %c128], %14 {strides = array<i32>} : memref<128x1152xbf16, #tpu.memory_space<vmem>>, vector<128x128xbf16>,
    %c0_i32_8 = arith.constant 0 : i32
    %16 = arith.addi %1, %c0_i32_8 : i32
    %c0_9 = arith.constant 0 : index
    %17 = arith.index_cast %16 : i32 to index
    %c2 = arith.constant 2 : index
    %c0_10 = arith.constant 0 : index
    %18 = vector.load %arg2[%c0_9, %17, %c2, %c0_10] : memref<1x18x18x128xf32, #tpu.memory_space<vmem>>, vector<1x8x16x128xf32>
    %19 = vector.shape_cast %18 : vector<1x8x16x128xf32> to vector<8x16x128xf32>
    %20 = arith.truncf %19 : vector<8x16x128xf32> to vector<8x16x128xbf16>
    %21 = vector.shape_cast %20 : vector<8x16x128xbf16> to vector<128x128xbf16>
    %c0_11 = arith.constant 0 : index
    %c256 = arith.constant 256 : index
    %22 = vector.load %arg8[%c0_11, %c256] : memref<128x1152xbf16, #tpu.memory_space<vmem>>, vector<128x128xbf16>
    tpu.vector_store %arg8[%c0_11, %c256], %21 {strides = array<i32>} : memref<128x1152xbf16, #tpu.memory_space<vmem>>, vector<128x128xbf16>,
    %c1_i32 = arith.constant 1 : i32
    %23 = arith.addi %1, %c1_i32 : i32
    %c0_12 = arith.constant 0 : index
    %24 = arith.index_cast %23 : i32 to index
    %c0_13 = arith.constant 0 : index
    %c0_14 = arith.constant 0 : index
    %25 = vector.load %arg2[%c0_12, %24, %c0_13, %c0_14] : memref<1x18x18x128xf32, #tpu.memory_space<vmem>>, vector<1x8x16x128xf32>
    %26 = vector.shape_cast %25 : vector<1x8x16x128xf32> to vector<8x16x128xf32>
    %27 = arith.truncf %26 : vector<8x16x128xf32> to vector<8x16x128xbf16>
    %28 = vector.shape_cast %27 : vector<8x16x128xbf16> to vector<128x128xbf16>
    %c0_15 = arith.constant 0 : index
    %c384 = arith.constant 384 : index
    %29 = vector.load %arg8[%c0_15, %c384] : memref<128x1152xbf16, #tpu.memory_space<vmem>>, vector<128x128xbf16>
    tpu.vector_store %arg8[%c0_15, %c384], %28 {strides = array<i32>} : memref<128x1152xbf16, #tpu.memory_space<vmem>>, vector<128x128xbf16>,
    %c1_i32_16 = arith.constant 1 : i32
    %30 = arith.addi %1, %c1_i32_16 : i32
    %c0_17 = arith.constant 0 : index
    %31 = arith.index_cast %30 : i32 to index
    %c1_18 = arith.constant 1 : index
    %c0_19 = arith.constant 0 : index
    %32 = vector.load %arg2[%c0_17, %31, %c1_18, %c0_19] : memref<1x18x18x128xf32, #tpu.memory_space<vmem>>, vector<1x8x16x128xf32>
    %33 = vector.shape_cast %32 : vector<1x8x16x128xf32> to vector<8x16x128xf32>
    %34 = arith.truncf %33 : vector<8x16x128xf32> to vector<8x16x128xbf16>
    %35 = vector.shape_cast %34 : vector<8x16x128xbf16> to vector<128x128xbf16>
    %c0_20 = arith.constant 0 : index
    %c512 = arith.constant 512 : index
    %36 = vector.load %arg8[%c0_20, %c512] : memref<128x1152xbf16, #tpu.memory_space<vmem>>, vector<128x128xbf16>
    tpu.vector_store %arg8[%c0_20, %c512], %35 {strides = array<i32>} : memref<128x1152xbf16, #tpu.memory_space<vmem>>, vector<128x128xbf16>,
    %c1_i32_21 = arith.constant 1 : i32
    %37 = arith.addi %1, %c1_i32_21 : i32
    %c0_22 = arith.constant 0 : index
    %38 = arith.index_cast %37 : i32 to index
    %c2_23 = arith.constant 2 : index
    %c0_24 = arith.constant 0 : index
    %39 = vector.load %arg2[%c0_22, %38, %c2_23, %c0_24] : memref<1x18x18x128xf32, #tpu.memory_space<vmem>>, vector<1x8x16x128xf32>
    %40 = vector.shape_cast %39 : vector<1x8x16x128xf32> to vector<8x16x128xf32>
    %41 = arith.truncf %40 : vector<8x16x128xf32> to vector<8x16x128xbf16>
    %42 = vector.shape_cast %41 : vector<8x16x128xbf16> to vector<128x128xbf16>
    %c0_25 = arith.constant 0 : index
    %c640 = arith.constant 640 : index
    %43 = vector.load %arg8[%c0_25, %c640] : memref<128x1152xbf16, #tpu.memory_space<vmem>>, vector<128x128xbf16>
    tpu.vector_store %arg8[%c0_25, %c640], %42 {strides = array<i32>} : memref<128x1152xbf16, #tpu.memory_space<vmem>>, vector<128x128xbf16>,
    %c2_i32 = arith.constant 2 : i32
    %44 = arith.addi %1, %c2_i32 : i32
    %c0_26 = arith.constant 0 : index
    %45 = arith.index_cast %44 : i32 to index
    %c0_27 = arith.constant 0 : index
    %c0_28 = arith.constant 0 : index
    %46 = vector.load %arg2[%c0_26, %45, %c0_27, %c0_28] : memref<1x18x18x128xf32, #tpu.memory_space<vmem>>, vector<1x8x16x128xf32>
    %47 = vector.shape_cast %46 : vector<1x8x16x128xf32> to vector<8x16x128xf32>
    %48 = arith.truncf %47 : vector<8x16x128xf32> to vector<8x16x128xbf16>
    %49 = vector.shape_cast %48 : vector<8x16x128xbf16> to vector<128x128xbf16>
    %c0_29 = arith.constant 0 : index
    %c768 = arith.constant 768 : index
    %50 = vector.load %arg8[%c0_29, %c768] : memref<128x1152xbf16, #tpu.memory_space<vmem>>, vector<128x128xbf16>
    tpu.vector_store %arg8[%c0_29, %c768], %49 {strides = array<i32>} : memref<128x1152xbf16, #tpu.memory_space<vmem>>, vector<128x128xbf16>,
    %c2_i32_30 = arith.constant 2 : i32
    %51 = arith.addi %1, %c2_i32_30 : i32
    %c0_31 = arith.constant 0 : index
    %52 = arith.index_cast %51 : i32 to index
    %c1_32 = arith.constant 1 : index
    %c0_33 = arith.constant 0 : index
    %53 = vector.load %arg2[%c0_31, %52, %c1_32, %c0_33] : memref<1x18x18x128xf32, #tpu.memory_space<vmem>>, vector<1x8x16x128xf32>
    %54 = vector.shape_cast %53 : vector<1x8x16x128xf32> to vector<8x16x128xf32>
    %55 = arith.truncf %54 : vector<8x16x128xf32> to vector<8x16x128xbf16>
    %56 = vector.shape_cast %55 : vector<8x16x128xbf16> to vector<128x128xbf16>
    %c0_34 = arith.constant 0 : index
    %c896 = arith.constant 896 : index
    %57 = vector.load %arg8[%c0_34, %c896] : memref<128x1152xbf16, #tpu.memory_space<vmem>>, vector<128x128xbf16>
    tpu.vector_store %arg8[%c0_34, %c896], %56 {strides = array<i32>} : memref<128x1152xbf16, #tpu.memory_space<vmem>>, vector<128x128xbf16>,
    %c2_i32_35 = arith.constant 2 : i32
    %58 = arith.addi %1, %c2_i32_35 : i32
    %c0_36 = arith.constant 0 : index
    %59 = arith.index_cast %58 : i32 to index
    %c2_37 = arith.constant 2 : index
    %c0_38 = arith.constant 0 : index
    %60 = vector.load %arg2[%c0_36, %59, %c2_37, %c0_38] : memref<1x18x18x128xf32, #tpu.memory_space<vmem>>, vector<1x8x16x128xf32>
    %61 = vector.shape_cast %60 : vector<1x8x16x128xf32> to vector<8x16x128xf32>
    %62 = arith.truncf %61 : vector<8x16x128xf32> to vector<8x16x128xbf16>
    %63 = vector.shape_cast %62 : vector<8x16x128xbf16> to vector<128x128xbf16>
    %c0_39 = arith.constant 0 : index
    %c1024 = arith.constant 1024 : index
    %64 = vector.load %arg8[%c0_39, %c1024] : memref<128x1152xbf16, #tpu.memory_space<vmem>>, vector<128x128xbf16>
    tpu.vector_store %arg8[%c0_39, %c1024], %63 {strides = array<i32>} : memref<128x1152xbf16, #tpu.memory_space<vmem>>, vector<128x128xbf16>,
    %c0_40 = arith.constant 0 : index
    %c0_41 = arith.constant 0 : index
    %65 = vector.load %arg8[%c0_40, %c0_41] : memref<128x1152xbf16, #tpu.memory_space<vmem>>, vector<128x1152xbf16>
    %c0_42 = arith.constant 0 : index
    %c0_43 = arith.constant 0 : index
    %66 = vector.load %arg3[%c0_42, %c0_43] : memref<1152x128xbf16, #tpu.memory_space<vmem>>, vector<1152x128xbf16>
    %cst = arith.constant dense<0.000000e+00> : vector<128x128xf32>
    %67 = tpu.matmul %65, %66, %cst {dimension_numbers = #tpu.dot_dimension_numbers<[1], [0], [0], [1], [0, 0, 1, 1], [], []>} : vector<128x1152xbf16>, vector<1152x128xbf16>, vector<128x128xf32> -> vector<128x128xf32>
    %c0_44 = arith.constant 0 : index
    %c0_45 = arith.constant 0 : index
    %68 = vector.load %arg4[%c0_44, %c0_45] : memref<1x128xf32, #tpu.memory_space<vmem>>, vector<1x128xf32>
    %69 = vector.broadcast %68 : vector<1x128xf32> to vector<128x128xf32>
    %70 = arith.addf %67, %69 : vector<128x128xf32>
    %cst_46 = arith.constant 0.000000e+00 : f32
    %71 = vector.broadcast %cst_46 : f32 to vector<128x128xf32>
    %72 = arith.cmpf ogt, %70, %71 : vector<128x128xf32>
    %cst_47 = arith.constant 1.000000e-01 : f32
    %73 = vector.broadcast %cst_47 : f32 to vector<128x128xf32>
    %74 = arith.mulf %73, %70 : vector<128x128xf32>
    %75 = arith.select %72, %70, %74 : vector<128x128xi1>, vector<128x128xf32>
    %76 = arith.truncf %75 : vector<128x128xf32> to vector<128x128xbf16>
    %c0_48 = arith.constant 0 : index
    %c0_49 = arith.constant 0 : index
    %77 = vector.load %arg5[%c0_48, %c0_49] : memref<15x128xbf16, #tpu.memory_space<vmem>>, vector<15x128xbf16>
    %cst_50 = arith.constant dense<0.000000e+00> : vector<15x128xf32>
    %78 = tpu.matmul %77, %76, %cst_50 {dimension_numbers = #tpu.dot_dimension_numbers<[1], [1], [0], [0], [0, 0, 1, 0], [], []>} : vector<15x128xbf16>, vector<128x128xbf16>, vector<15x128xf32> -> vector<15x128xf32>
    %c0_51 = arith.constant 0 : index
    %c0_52 = arith.constant 0 : index
    %79 = vector.load %arg6[%c0_51, %c0_52] : memref<15x1xf32, #tpu.memory_space<vmem>>, vector<15x1xf32>
    %80 = vector.broadcast %79 : vector<15x1xf32> to vector<15x128xf32>
    %81 = arith.addf %78, %80 : vector<15x128xf32>
    %82 = vector.shape_cast %81 : vector<15x128xf32> to vector<1x15x128xf32>
    %c0_53 = arith.constant 0 : index
    %c0_54 = arith.constant 0 : index
    %c0_55 = arith.constant 0 : index
    %83 = vector.load %arg7[%c0_53, %c0_54, %c0_55] : memref<1x15x128xf32, #tpu.memory_space<vmem>>, vector<1x15x128xf32>
    tpu.vector_store %arg7[%c0_53, %c0_54, %c0_55], %82 {strides = array<i32>} : memref<1x15x128xf32, #tpu.memory_space<vmem>>, vector<1x15x128xf32>,
    return
  }
  func.func @transform_0(%arg0: i32, %arg1: i32) -> (i32, i32, i32, i32) {
    %c0_i32 = arith.constant 0 : i32
    %c0_i32_0 = arith.constant 0 : i32
    %c0_i32_1 = arith.constant 0 : i32
    %c0_i32_2 = arith.constant 0 : i32
    return %arg0, %c0_i32, %c0_i32_0, %c0_i32_1 : i32, i32, i32, i32
  }
  func.func @transform_1(%arg0: i32, %arg1: i32) -> (i32, i32) {
    %c0_i32 = arith.constant 0 : i32
    %c0_i32_0 = arith.constant 0 : i32
    %c0_i32_1 = arith.constant 0 : i32
    return %c0_i32, %c0_i32_0 : i32, i32
  }
  func.func @transform_2(%arg0: i32, %arg1: i32) -> (i32, i32) {
    %c0_i32 = arith.constant 0 : i32
    %c0_i32_0 = arith.constant 0 : i32
    %c0_i32_1 = arith.constant 0 : i32
    return %c0_i32, %c0_i32_0 : i32, i32
  }
  func.func @transform_3(%arg0: i32, %arg1: i32) -> (i32, i32) {
    %c0_i32 = arith.constant 0 : i32
    %c0_i32_0 = arith.constant 0 : i32
    %c0_i32_1 = arith.constant 0 : i32
    return %c0_i32, %c0_i32_0 : i32, i32
  }
  func.func @transform_4(%arg0: i32, %arg1: i32) -> (i32, i32) {
    %c0_i32 = arith.constant 0 : i32
    %c0_i32_0 = arith.constant 0 : i32
    %c0_i32_1 = arith.constant 0 : i32
    return %c0_i32, %c0_i32_0 : i32, i32
  }
  func.func @transform_5(%arg0: i32, %arg1: i32) -> (i32, i32, i32) {
    %c0_i32 = arith.constant 0 : i32
    %c0_i32_0 = arith.constant 0 : i32
    return %arg0, %c0_i32, %arg1 : i32, i32, i32
  }
}

</mosaic_0001>

<bundles_post_ra>
// kernel: scaled_prediction.1
= control target key start
LH: loop header
LB: loop body
LE: loop exit
PB: predicated region body
PF: predicated region fallthrough
CT: control target
= control target key end

     0   :  { %s3732_s0 = inlined_call_operand.hbm [shape: f32[2,18,18,128], index: 0, kind: input, shape index: {}]   ;;  %s3733_s1 = inlined_call_operand.hbm [shape: bf16[1152,128], index: 1, kind: input, shape index: {}]   ;;  %s3734_s2 = inlined_call_operand.hbm [shape: f32[1,128], index: 2, kind: input, shape index: {}]   ;;  %s3735_s3 = inlined_call_operand.hbm [shape: bf16[15,128], index: 3, kind: input, shape index: {}]   ;;  %s3736_s4 = inlined_call_operand.hbm [shape: f32[15,1], index: 4, kind: input, shape index: {}]   ;;  %s3737_s5 = inlined_call_operand.hbm [shape: f32[2,15,256], index: 5, kind: output, shape index: {}]  }
   0x1   :  { %3751 = sst [smem:[#allocation22_spill]] %s3733_s1 }
   0x2   :  { %3752 = sst [smem:[#allocation23_spill]] %s3734_s2 }
   0x3   :  { %3753 = sst [smem:[#allocation24_spill]] %s3737_s5 }
   0x4   :  { %10 = vsyncpa [#allocation4], 0 }
   0x5   :  { %12 = vsyncpa [#allocation4 + $0x1], 0 }
   0x6   :  { %13 = vsyncpa [#allocation7], 0 }
   0x7   :  { %14 = vsyncpa [#allocation10], 0 }
   0x8   :  { %15 = vsyncpa [#allocation5], 0 }
   0x9   :  { %17 = vsyncpa [#allocation5 + $0x1], 0  ;;  %s3098_s18 = smov 0   ;;  %s3100_s19 = smov 0  }
   0xa   :  { %s3102_s20 = smov 0   ;;  %s3104_s21 = smov 0  }
   0xb   :  { %s3106_s22 = smov 0   ;;  %s3108_s23 = smov 0  }
   0xc   :  { %s3110_s24 = smov 0   ;;  %s3112_s25 = smov 0  }
   0xd   :  { %s3114_s26 = smov 0   ;;  %s3116_s27 = smov 0  }
   0xe   :  { %s3118_s28 = smov 0  }
   0xf LB: > { %3754 = sst [smem:[#allocation17_spill]] %s3010_s18  ;;  %s2019_s29 = sadd.s32 4294967295, %s3050_s28   ;;  %s3050_s28 = sphi %s3118_s28, %s23_s28   ;;  %s3046_s27 = sphi %s3116_s27, %s3793_s27   ;;  %s3042_s26 = sphi %s3114_s26, %s3792_s26   ;;  %s3038_s25 = sphi %s3112_s25, %s3791_s25   ;;  %s3034_s24 = sphi %s3110_s24, %s3790_s24   ;;  %s3030_s23 = sphi %s3108_s23, %s3789_s23   ;;  %s3026_s22 = sphi %s3106_s22, %s3788_s22   ;;  %s3022_s21 = sphi %s3104_s21, %s3787_s21   ;;  %s3018_s20 = sphi %s3102_s20, %s3786_s20   ;;  %s3014_s19 = sphi %s3100_s19, %s3785_s19   ;;  %s3010_s18 = sphi %s3098_s18, %s3784_s18  }
  0x10   : > { %3755 = sst [smem:[#allocation18_spill]] %s3014_s19  ;;  %s2020_s30 = sadd.s32 4294967294, %s3050_s28  }
  0x11   : > { %3756 = sst [smem:[#allocation19_spill]] %s3038_s25  ;;  %p55_p0 = scmp.ne.s32.totalorder %s3026_s22, %s3022_s21 }
  0x12   : > { %p3154_p1 = scmp.eq.s32.totalorder %s2019_s29, 0  ;;  %p164_p2 = scmp.ne.s32.totalorder %s3018_s20, %s3014_s19 }
  0x13   : > { %p165_p3 = scmp.eq.s32.totalorder %s2019_s29, 3  ;;  %p170_p5 = scmp.ne.s32.totalorder %s3014_s19, %s3010_s18 }
  0x14   : > { %s3757_s6 = scalar_select %p3154_p1, 1, 0 }
  0x15   : > { %p3162_p4 = por %p3154_p1, %p55_p0  ;;  %p3168_p6 = por %p165_p3, %p164_p2 }
  0x16   : > { %p171_p7 = scmp.eq.s32.totalorder %s2020_s30, 3  ;;  %p2021_p8 = scmp.ge.s32.totalorder %s3050_s28, 1 }
  0x17   : > { %s3758_s7 = scalar_select %p3162_p4, 1, 0 }
  0x18   : > { %s3759_s8 = scalar_select %p3168_p6, 1, 0 }
  0x19   : > { %p178_p9 = scmp.lt.s32.totalorder %s3050_s28, 5  ;;  %p3174_p10 = por %p171_p7, %p170_p5 }
  0x1a   : > { %3760 = sst [smem:[#allocation20_spill]] %s3759_s8  ;;  %s3052_s11 = smov [#allocation6]  }
  0x1b   : > { %s3761_s9 = scalar_select %p3174_p10, 1, 0 }
  0x1c   : > { %p3178_p11 = pnand %p2021_p8, %p178_p9  ;;  %s190_s12 = sshll.u32 %s3052_s11, 4  ;;  %s191_s12 = int_to_ptr.vmem [resolvable:$true] %s190_s12 }
  0x1d   : > { %3762 = sst [smem:[#allocation21_spill]] %s3761_s9  ;;  %s3053_s14 = smov [#allocation9]  }
  0x1e   : > { %s3763_s10 = scalar_select %p3178_p11, 1, 0 }
  0x1f   : > { %p2571_p12 = pneg %p3178_p11  ;;  %s214_s15 = sshll.u32 %s3053_s14, 4  ;;  %s3190_s15 = int_to_ptr.vmem [resolvable:$true] %s214_s15 }
  0x20   : > { %s3765_s1 = sld [smem:[#allocation22_spill]] }
  0x21   : > { %p3186_p13 = pnand %p2571_p12, %p3154_p1 }
  0x23   : > { %p3200_p2 = pneg %p3186_p13 }
  0x26   : > { %s2778_s21 = scalar_lea.hbm %s3765_s1, 9216 }
  0x27   : > { %p2779_p0 = scmp.ne.s32.totalorder %s3765_s1, %s2778_s21  ;;  %p2785_p7 = scmp.lt.u32.totalorder %s2778_s21, %s3765_s1 }
  0x29   : > { %p2781_p3 = pnand %p3200_p2, %p2779_p0 }
  0x2b   : > { %p2782_p5 = pneg %p2781_p3 }
  0x2d   : > { %p2787_p8 = pnand %p2785_p7, %p2782_p5 }
  0x2f   : > { %2790 = shalt.err (!%p2787_p8)
}
  0x30   : > { %s2791_s16 = scalar_lea.vmem %s191_s12, 9216  ;;  %p2799_p6 = scmp.lt.s32.totalorder %s191_s12, %s191_s12 }
  0x31   : > { %p2792_p9 = scmp.ne.s32.totalorder %s191_s12, %s2791_s16  ;;  %p2800_p1 = scmp.lt.s32.totalorder %s2791_s16, %s2791_s16 }
  0x33   : > { %p2794_p12 = pnand %p2792_p9, %p3200_p2  ;;  %p2801_p4 = por %p2800_p1, %p2799_p6 }
  0x35   : > { %p2795_p10 = pneg %p2794_p12 }
  0x37   : > { %p2802_p11 = pnand %p2801_p4, %p2795_p10 }
  0x39   : > { %2805 = shalt.err (!%p2802_p11)
}
  0x3a   : > { %s3054_s17 = smov 64   ;;  %s3055_s29 = smov 4  }
  0x3b   : > { %2574 = dma.hbm_to_vmem [thread:$0]  (!%p3186_p13), %s3765_s1, 9216, %s191_s12, [#allocation7], %s3054_s17, %s3054_s17, %s3055_s29  }
  0x3c   : > { %s2806_s18 = scalar_lea.hbm %s3735_s3, 128 }
  0x3d   : > { %p2807_p0 = scmp.ne.s32.totalorder %s3735_s3, %s2806_s18  ;;  %p2813_p6 = scmp.lt.u32.totalorder %s2806_s18, %s3735_s3 }
  0x3f   : > { %p2809_p1 = pnand %p2807_p0, %p3200_p2 }
  0x41   : > { %p2810_p4 = pneg %p2809_p1 }
  0x43   : > { %p2815_p10 = pnand %p2813_p6, %p2810_p4 }
  0x45   : > { %2818 = shalt.err (!%p2815_p10)
}
  0x46   : > { %s2819_s12 = scalar_lea.vmem %s3190_s15, 128  ;;  %p2827_p7 = scmp.lt.s32.totalorder %s3190_s15, %s3190_s15 }
  0x47   : > { %p2820_p11 = scmp.ne.s32.totalorder %s3190_s15, %s2819_s12  ;;  %p2828_p8 = scmp.lt.s32.totalorder %s2819_s12, %s2819_s12 }
  0x49   : > { %p2822_p3 = pnand %p2820_p11, %p3200_p2  ;;  %p2829_p9 = por %p2828_p8, %p2827_p7 }
  0x4b   : > { %p2823_p5 = pneg %p2822_p3 }
  0x4d   : > { %p2830_p12 = pnand %p2829_p9, %p2823_p5 }
  0x4f   : > { %2833 = shalt.err (!%p2830_p12)
}
  0x50   : > { %2580 = dma.hbm_to_vmem [thread:$0]  (!%p3186_p13), %s3735_s3, 128, %s3190_s15, [#allocation10], %s3054_s17, %s3054_s17, %s3055_s29  }
  0x51   : > { %s3056_s25 = smov [#allocation8]   ;;  %s3057_s9 = smov [#allocation11]  }
  0x52   : > { %s204_s8 = sshll.u32 %s3056_s25, 4  ;;  %s227_s21 = sshll.u32 %s3057_s9, 4  ;;  %s205_s8 = int_to_ptr.vmem [resolvable:$true] %s204_s8  ;;  %s228_s21 = int_to_ptr.vmem [resolvable:$true] %s227_s21 }
  0x53   : > { %s3767_s2 = sld [smem:[#allocation23_spill]] }
  0x59   : > { %s2834_s16 = scalar_lea.hbm %s3767_s2, 16 }
  0x5a   : > { %p2835_p0 = scmp.ne.s32.totalorder %s3767_s2, %s2834_s16  ;;  %p2841_p6 = scmp.lt.u32.totalorder %s2834_s16, %s3767_s2 }
  0x5c   : > { %p2837_p1 = pnand %p2835_p0, %p3200_p2 }
  0x5e   : > { %p2838_p4 = pneg %p2837_p1 }
  0x60   : > { %p2843_p10 = pnand %p2841_p6, %p2838_p4 }
  0x62   : > { %2846 = shalt.err (!%p2843_p10)
}
  0x63   : > { %s2847_s15 = scalar_lea.vmem %s205_s8, 16  ;;  %s2854_s17 = scalar_lea.vmem %s205_s8, 32 }
  0x64   : > { %p2848_p11 = scmp.ne.s32.totalorder %s205_s8, %s2847_s15  ;;  %p2855_p7 = scmp.lt.s32.totalorder %s205_s8, %s205_s8 }
  0x65   : > { %p2856_p8 = scmp.lt.s32.totalorder %s2854_s17, %s2847_s15 }
  0x66   : > { %p2850_p3 = pnand %p2848_p11, %p3200_p2 }
  0x67   : > { %p2857_p9 = por %p2856_p8, %p2855_p7 }
  0x68   : > { %p2851_p5 = pneg %p2850_p3 }
  0x6a   : > { %p2858_p12 = pnand %p2857_p9, %p2851_p5 }
  0x6c   : > { %2861 = shalt.err (!%p2858_p12)
}
  0x6d   : > { %2577 = dma.hbm_to_vmem [thread:$0]  (!%p3186_p13), %s3767_s2, 16, %s205_s8, [#allocation7]  }
  0x6e   : > { %s2862_s25 = scalar_lea.hbm %s3736_s4, 256 }
  0x6f   : > { %p2863_p0 = scmp.ne.s32.totalorder %s3736_s4, %s2862_s25  ;;  %p2869_p6 = scmp.lt.u32.totalorder %s2862_s25, %s3736_s4 }
  0x71   : > { %p2865_p1 = pnand %p2863_p0, %p3200_p2 }
  0x73   : > { %p2866_p4 = pneg %p2865_p1 }
  0x75   : > { %p2871_p10 = pnand %p2869_p6, %p2866_p4 }
  0x77   : > { %2874 = shalt.err (!%p2871_p10)
}
  0x78   : > { %s2875_s12 = scalar_lea.vmem %s228_s21, 256  ;;  %p2883_p7 = scmp.lt.s32.totalorder %s228_s21, %s228_s21 }
  0x79   : > { %p2876_p11 = scmp.ne.s32.totalorder %s228_s21, %s2875_s12  ;;  %p2884_p8 = scmp.lt.s32.totalorder %s2875_s12, %s2875_s12 }
  0x7b   : > { %p2878_p3 = pnand %p2876_p11, %p3200_p2  ;;  %p2885_p9 = por %p2884_p8, %p2883_p7 }
  0x7d   : > { %p2879_p5 = pneg %p2878_p3 }
  0x7f   : > { %p2886_p12 = pnand %p2885_p9, %p2879_p5 }
  0x81   : > { %2889 = shalt.err (!%p2886_p12)
}
  0x82   : > { %s3749_s8 = smov 128   ;;  %s3750_s11 = smov 8  }
  0x83   : > { %2583 = dma.hbm_to_vmem [thread:$0]  (!%p3186_p13), %s3736_s4, 256, %s228_s21, [#allocation10], %s3749_s8, %s3749_s8, %s3750_s11  }
  0x84   : > { %s32_s17 = sadd.s32 1, %s3042_s26  ;;  %s35_s1 = sadd.s32 1, %s3046_s27 }
  0x85   : > { %p33_p2 = scmp.ge.s32.totalorder %s32_s17, 2  ;;  %s42_s29 = sadd.s32 1, %s3030_s23 }
  0x86   : > { %p49_p0 = scmp.ne.s32.totalorder %s3030_s23, %s3026_s22  ;;  %p50_p1 = scmp.eq.s32.totalorder %s3050_s28, 0 }
  0x87   : > { %s3795_s17 = smov (%p33_p2, %s32_s17), 0  ;;  %s3797_s1 = smov (!%p33_p2, %s35_s1), %s3046_s27 }
  0x88   : > { %s150_s13 = ssub.s32 %s3042_s26, %s3795_s17  ;;  %p37_p4 = scmp.ge.s32.totalorder %s3797_s1, 2 }
  0x89   : > { %s154_s19 = sadd.s32 1, %s3018_s20  ;;  %p3290_p6 = por %p50_p1, %p49_p0 }
  0x8a   : > { %p2596_p13 = scmp.lt.s32.totalorder %s3050_s28, 4  ;;  %s3799_s1 = smov (%p37_p4, %s3797_s1), 0 }
  0x8b   : > { %s241_s18 = sand.u32 1, %s3030_s23   ;;  %s2549_s25 = smul.u32 6912, %s3046_s27 }
  0x8c   : > { %s39_s9 = ssub.s32 %s3046_s27, %s3799_s1  ;;  %s2548_s14 = smul.u32 432, %s241_s18 }
  0x8d   : > { %p40_p10 = scmp.eq.s32.totalorder %s39_s9, 0  ;;  %s151_s30 = sor.u32 %s150_s13, %s39_s9 }
  0x8e   : > { %p152_p11 = scmp.eq.s32.totalorder %s151_s30, 0  ;;  %s3310_s8 = scalar_lea.hbm %s3732_s0, %s2549_s25 }
  0x8f   : > { %s3302_s16 = scalar_select %p40_p10, %s3030_s23, %s42_s29  }
  0x90   : > { %s3305_s12 = scalar_select %p152_p11, %s3018_s20, %s154_s19  }
  0x91   : > { %s245_s11 = scalar_lea.vmem [#allocation3], %s2548_s14  ;;  %p3316_p3 = pnand %p2596_p13, %p3290_p6 }
  0x92   : > { %s252_s2 = sshll.u32 %s245_s11, 4  ;;  %s3322_s29 = scalar_lea.sflag [#allocation4], %s241_s18  ;;  %s3320_s2 = int_to_ptr.vmem [resolvable:$true] %s252_s2 }
  0x93   : > { %s2890_s19 = scalar_lea.hbm %s3310_s8, 6912  ;;  %p2892_p7 = pneg %p3316_p3 }
  0x94   : > { %p2891_p5 = scmp.ne.s32.totalorder %s3310_s8, %s2890_s19  ;;  %s2895_s25 = scalar_lea.hbm %s3732_s0, 13824 }
  0x95   : > { %p2896_p12 = scmp.lt.u32.totalorder %s3310_s8, %s3732_s0  ;;  %p2897_p2 = scmp.lt.u32.totalorder %s2895_s25, %s2890_s19 }
  0x96   : > { %p2893_p8 = pnand %p2892_p7, %p2891_p5  ;;  %p2899_p1 = scmp.lt.u32.totalorder %s2890_s19, %s3310_s8 }
  0x97   : > { %p2898_p0 = por %p2897_p2, %p2896_p12 }
  0x98   : > { %p2894_p9 = pneg %p2893_p8 }
  0x99   : > { %p2900_p4 = por %p2899_p1, %p2898_p0 }
  0x9b   : > { %p2901_p6 = pnand %p2900_p4, %p2894_p9 }
  0x9d   : > { %2904 = shalt.err (!%p2901_p6)
}
  0x9e   : > { %s2905_s18 = scalar_lea.vmem %s3320_s2, 6912  ;;  %s3060_s14 = smov [#allocation3]  }
  0x9f   : > { %p2906_p13 = scmp.ne.s32.totalorder %s3320_s2, %s2905_s18  ;;  %s2910_s5 = sshll.u32 %s3060_s14, 4  ;;  %s2911_s5 = int_to_ptr.vmem [resolvable:$false] %s2910_s5 }
  0xa0   : > { %s2912_s15 = scalar_lea.vmem %s2911_s5, 13824  ;;  %p2913_p5 = scmp.lt.s32.totalorder %s3320_s2, %s2911_s5 }
  0xa1   : > { %p2908_p10 = pnand %p2906_p13, %p2892_p7  ;;  %p2914_p8 = scmp.lt.s32.totalorder %s2912_s15, %s2905_s18 }
  0xa3   : > { %p2909_p11 = pneg %p2908_p10  ;;  %p2915_p12 = por %p2914_p8, %p2913_p5 }
  0xa5   : > { %p2916_p2 = pnand %p2915_p12, %p2909_p11 }
  0xa7   : > { %2919 = shalt.err (!%p2916_p2)
}
  0xa8   : > { %s3770_s19 = smov 8   ;;  %s3771_s11 = smov 128  }
  0xa9   : > { %2587 = dma.hbm_to_vmem [thread:$0]  (!%p3316_p3), %s3310_s8, 6912, %s3320_s2, %s3322_s29, %s3771_s11, %s3771_s11, %s3770_s19  }
  0xaa   : > { %p3772_p7 = scmp.ne.s32.totalorder %s3763_s10, 0 }
  0xab   : > { %s266_s21 = sand.u32 (!%p3772_p7), 1, %s3026_s22   ;;  %p3773_p9 = scmp.ne.s32.totalorder (!%p3772_p7), %s3758_s7, 0 }
  0xac   : > { %264 = sbr.rel (%p3772_p7) target bundleno = 863 (0x35f), region = 40  ;;  %s267_s9 = scalar_lea.sflag (!%p3772_p7), [#allocation4], %s266_s21 }
  0xad   : > { %s3356_s25 = smul.u32 (!%p3772_p7), 432, %s266_s21 }
  0xaf   : > { %s270_s30 = scalar_lea.vmem (!%p3772_p7), [#allocation3], %s3356_s25 }
  0xb3   : > { %2993 = dma.done.wait (%p3773_p9), %s267_s9, 6912  }
  0xb4   : > { %2995 = vsyncadd (%p3773_p9), %s267_s9, 4294960384  ;;  %p3774_p0 = scmp.ne.s32.totalorder %s3757_s6, 0 }
  0xb6   : > { %2997 = dma.done.wait (%p3774_p0), [#allocation7], 9232  }
  0xb7   : > { %2999 = vsyncadd (%p3774_p0), [#allocation7], 4294958064 }
  0xb8   : > { %3001 = dma.done.wait (%p3774_p0), [#allocation10], 384  }
  0xb9   : > { %3003 = vsyncadd (%p3774_p0), [#allocation10], 4294966912  ;;  %v2705_v0 = vld [vmem:[#allocation6 + $0x40] sm:$0xff]   ;;  %v2709_v4 = vld [vmem:[#allocation6 + $0x48] sm:$0xff]   ;;  %s2035_s2 = smul.u32 192, %s3034_s24  ;;  %vm3062_vm0 = vmmov 0  }
  0xba   : > { %v2706_v1 = vld [vmem:[#allocation6] sm:$0xff]   ;;  %2215 = vmatprep.subr.bf16.mxu0 %v2705_v0  ;;  %v2710_v5 = vld [vmem:[#allocation6 + $0x8] sm:$0xff]   ;;  %v2713_v8 = vld [vmem:[#allocation6 + $0x50] sm:$0xff]   ;;  %s3775_s7 = sld [smem:[#allocation18_spill]]  ;;  %s3776_s10 = sld [smem:[#allocation19_spill]] }
  0xbb   : > { %v2707_v2 = vld [vmem:[#allocation6 + $0xc0] sm:$0xff]   ;;  %2216 = vmatpush3.bf16.msra.mxu0 %v2706_v1  ;;  %v2711_v6 = vld [vmem:[#allocation6 + $0xc8] sm:$0xff]   ;;  %v2714_v9 = vld [vmem:[#allocation6 + $0x10] sm:$0xff]   ;;  %s3374_s6 = scalar_lea.vmem %s270_s30, %s2035_s2 [#allocation3]  ;;  %s3777_s15 = sld [smem:[#allocation20_spill]] }
  0xbc   : > { %v2708_v3 = vld [vmem:[#allocation6 + $0x80] sm:$0xff]   ;;  %2279 = vmatprep.subr.bf16.mxu1 %v2707_v2  ;;  %2217 = vmatprep.subr.bf16.mxu0 %v2709_v4  ;;  %v2712_v7 = vld [vmem:[#allocation6 + $0x88] sm:$0xff]   ;;  %v2715_v10 = vld [vmem:[#allocation6 + $0xd0] sm:$0xff]  }
  0xbd   : > { %2280 = vmatpush3.bf16.msra.mxu1 %v2708_v3  ;;  %v2716_v11 = vld [vmem:[#allocation6 + $0x90] sm:$0xff]   ;;  %v2717_v12 = vld [vmem:[#allocation6 + $0x58] sm:$0xff]   ;;  %v2721_v16 = vld [vmem:[#allocation6 + $0x60] sm:$0xff]  }
  0xbe   : > { %2281 = vmatprep.subr.bf16.mxu1 %v2711_v6  ;;  %v2718_v13 = vld [vmem:[#allocation6 + $0x18] sm:$0xff]   ;;  %v2722_v17 = vld [vmem:[#allocation6 + $0x20] sm:$0xff]   ;;  %v2725_v20 = vld [vmem:[#allocation6 + $0x68] sm:$0xff]  }
  0xbf   : > { %2218 = vmatpush3.bf16.msra.mxu0 %v2710_v5  ;;  %v2719_v14 = vld [vmem:[#allocation6 + $0xd8] sm:$0xff]   ;;  %v2723_v18 = vld [vmem:[#allocation6 + $0xe0] sm:$0xff]   ;;  %v2726_v21 = vld [vmem:[#allocation6 + $0x28] sm:$0xff]  }
  0xc0   : > { %2219 = vmatprep.subr.bf16.mxu0 %v2713_v8  ;;  %v2720_v15 = vld [vmem:[#allocation6 + $0x98] sm:$0xff]   ;;  %v2724_v19 = vld [vmem:[#allocation6 + $0xa0] sm:$0xff]   ;;  %v2727_v22 = vld [vmem:[#allocation6 + $0xe8] sm:$0xff]   ;;  %s310_s8 = sand.u32 1, %s3775_s7   ;;  %s2211_s29 = sshll.u32 %s3776_s10, 2 }
  0xc1   : > { %2282 = vmatpush3.bf16.msra.mxu1 %v2712_v7  ;;  %v2728_v23 = vld [vmem:[#allocation6 + $0xa8] sm:$0xff]   ;;  %v2729_v24 = vld [vmem:[#allocation6 + $0x70] sm:$0xff]   ;;  %v2733_v28 = vld [vmem:[#allocation6 + $0x78] sm:$0xff]   ;;  %s2033_s13 = sshll.u32 %s310_s8, 4  ;;  %s1882_s18 = sadd.s32 %s3034_s24, %s2211_s29 }
  0xc2   : > { %2283 = vmatprep.subr.bf16.mxu1 %v2715_v10  ;;  %v2730_v25 = vld [vmem:[#allocation6 + $0x30] sm:$0xff]   ;;  %v2734_v29 = vld [vmem:[#allocation6 + $0x38] sm:$0xff]   ;;  %v349_v31 = vld [vmem:[%s3374_s6 + $0x1] sm:$0xff]  ;;  %s312_s14 = scalar_lea.vmem [#allocation12], %s2033_s13  ;;  %s2212_s19 = sshll.u32 %s1882_s18, 7 }
  0xc3   : > { %2220 = vmatpush3.bf16.msra.mxu0 %v2714_v9  ;;  %v2731_v26 = vld [vmem:[#allocation6 + $0xf0] sm:$0xff]   ;;  %v2735_v30 = vld [vmem:[#allocation6 + $0xf8] sm:$0xff]   ;;  %v317_v35 = vld [vmem:[%s3374_s6] sm:$0xff]  ;;  %s1885_s5 = sshll.u32 %s312_s14, 4  ;;  %s3778_s24 = sld [smem:[#allocation24_spill]]  ;;  %s3664_s5 = int_to_ptr.vmem [resolvable:$true] %s1885_s5 }
  0xc4   : > { %2221 = vmatprep.subr.bf16.mxu0 %v2717_v12  ;;  %v2732_v27 = vld [vmem:[#allocation6 + $0xb0] sm:$0xff]   ;;  %v2736_v34 = vld [vmem:[#allocation6 + $0xb8] sm:$0xff]   ;;  %v318_v36 = vld [vmem:[%s3374_s6 + $0x8] sm:$0xff]  ;;  %s3671_s30 = scalar_lea.sflag [#allocation5], %s310_s8  ;;  %s2920_s2 = scalar_lea.vmem %s3664_s5, 256 }
  0xc5   : > { %2284 = vmatpush3.bf16.msra.mxu1 %v2716_v11  ;;  %v350_v32 = vld [vmem:[%s3374_s6 + $0x9] sm:$0xff]  ;;  %v333_v37 = vpack.c.bf16 %v318_v36, %v317_v35  ;;  %v2737_v38 = vld [vmem:[#allocation6 + $0x140] sm:$0xff]   ;;  %v2038_v39 = vld [vmem:[%s3374_s6 + $0x18] sm:$0xff]  ;;  %p2921_p3 = scmp.ne.s32.totalorder %s3664_s5, %s2920_s2  ;;  %p3780_p1 = scmp.ne.s32.totalorder %s3777_s15, 0 }
  0xc6   : > { %2285 = vmatprep.subr.bf16.mxu1 %v2719_v14  ;;  %v365_v33 = vpack.c.bf16 %v350_v32, %v349_v31  ;;  %v2039_v40 = vld [vmem:[%s3374_s6 + $0x20] sm:$0xff]  ;;  %v382_v44 = vld [vmem:[%s3374_s6 + $0xa] sm:$0xff]  ;;  %v2041_v51 = vld [vmem:[%s3374_s6 + $0x38] sm:$0xff] }
  0xc7   : > { %2222 = vmatpush3.bf16.msra.mxu0 %v2718_v13  ;;  %v432_v41 = vpack.c.bf16 %v2039_v40, %v2038_v39  ;;  %v2738_v42 = vld [vmem:[#allocation6 + $0x100] sm:$0xff]   ;;  %v2739_v49 = vld [vmem:[#allocation6 + $0x148] sm:$0xff]   ;;  %v2040_v50 = vld [vmem:[%s3374_s6 + $0x30] sm:$0xff]  ;;  %p2922_p4 = pnand %p2921_p3, %p3780_p1 }
  0xc8   : > { %2223 = vmatprep.subr.bf16.mxu0 %v2721_v16  ;;  %1298 = vmatprep.mubr.bf16.mxu0 %v365_v33  ;;  %v381_v43 = vld [vmem:[%s3374_s6 + $0x2] sm:$0xff]  ;;  %v351_v45 = vld [vmem:[%s3374_s6 + $0x19] sm:$0xff]  ;;  %v3390_v52 = vpack.c.bf16 %v2041_v51, %v2040_v50  ;;  %v353_v56 = vld [vmem:[%s3374_s6 + $0x31] sm:$0xff] }
  0xc9   : > { %2286 = vmatpush3.bf16.msra.mxu1 %v2720_v15  ;;  %1395 = vmatprep.mubr.bf16.mxu1 %v432_v41  ;;  %v397_v46 = vpack.c.bf16 %v382_v44, %v381_v43  ;;  %v352_v47 = vld [vmem:[%s3374_s6 + $0x21] sm:$0xff]  ;;  %v354_v57 = vld [vmem:[%s3374_s6 + $0x39] sm:$0xff]  ;;  %v2741_v59 = vld [vmem:[#allocation6 + $0x150] sm:$0xff]   ;;  %s3779_s9 = smov %s3778_s24  ;;  %s3669_s25 = scalar_lea.hbm %s3778_s24, %s2212_s19 }
  0xca   : > { %2287 = vmatprep.subr.bf16.mxu1 %v2723_v18  ;;  %v3386_v48 = vpack.c.bf16 %v352_v47, %v351_v45  ;;  %v2740_v53 = vld [vmem:[#allocation6 + $0x108] sm:$0xff]   ;;  %v383_v54 = vld [vmem:[%s3374_s6 + $0x1a] sm:$0xff]  ;;  %v3398_v58 = vpack.c.bf16 %v354_v57, %v353_v56  ;;  %v2043_v61 = vld [vmem:[%s3374_s6 + $0x50] sm:$0xff]  ;;  %p2923_p6 = pneg %p2922_p4 }
  0xcb   : > { %2224 = vmatpush3.bf16.msra.mxu0 %v2722_v17  ;;  %v384_v55 = vld [vmem:[%s3374_s6 + $0x22] sm:$0xff]  ;;  %v2742_v63 = vld [vmem:[#allocation6 + $0x110] sm:$0xff]   ;;  %v2743_v3 = vld [vmem:[#allocation6 + $0x158] sm:$0xff]  }
  0xcc   : > { %2225 = vmatprep.subr.bf16.mxu0 %v2725_v20  ;;  %v2042_v60 = vld [vmem:[%s3374_s6 + $0x48] sm:$0xff]  ;;  %v3402_v62 = vpack.c.bf16 %v384_v55, %v383_v54  ;;  %v356_v2 = vld [vmem:[%s3374_s6 + $0x51] sm:$0xff]  ;;  %v386_v6 = vld [vmem:[%s3374_s6 + $0x3a] sm:$0xff] }
  0xcd   : > { %2288 = vmatpush3.bf16.msra.mxu1 %v2724_v19  ;;  %v3404_v0 = vpack.c.bf16 %v2043_v61, %v2042_v60  ;;  %v355_v1 = vld [vmem:[%s3374_s6 + $0x49] sm:$0xff]  ;;  %v2744_v4 = vld [vmem:[#allocation6 + $0x118] sm:$0xff]   ;;  %v2044_v7 = vld [vmem:[%s3374_s6 + $0x60] sm:$0xff] }
  0xce   : > { %2289 = vmatprep.subr.bf16.mxu1 %v2727_v22  ;;  %v385_v5 = vld [vmem:[%s3374_s6 + $0x32] sm:$0xff]  ;;  %v3414_v8 = vpack.c.bf16 %v356_v2, %v355_v1  ;;  %v2045_v9 = vld [vmem:[%s3374_s6 + $0x68] sm:$0xff]  ;;  %v2745_v10 = vld [vmem:[#allocation6 + $0x160] sm:$0xff]  }
  0xcf   : > { %2226 = vmatpush3.bf16.msra.mxu0 %v2726_v21  ;;  %v3417_v11 = vpack.c.bf16 %v386_v6, %v385_v5  ;;  %v2746_v12 = vld [vmem:[#allocation6 + $0x120] sm:$0xff]   ;;  %v3420_v13 = vpack.c.bf16 %v2045_v9, %v2044_v7  ;;  %v358_v15 = vld [vmem:[%s3374_s6 + $0x69] sm:$0xff]  ;;  %v388_v18 = vld [vmem:[%s3374_s6 + $0x52] sm:$0xff] }
  0xd0   : > { %2227 = vmatprep.subr.bf16.mxu0 %v2729_v24  ;;  %v357_v14 = vld [vmem:[%s3374_s6 + $0x61] sm:$0xff]  ;;  %v387_v17 = vld [vmem:[%s3374_s6 + $0x4a] sm:$0xff]  ;;  %v2046_v20 = vld [vmem:[%s3374_s6 + $0x78] sm:$0xff] }
  0xd1   : > { %2290 = vmatpush3.bf16.msra.mxu1 %v2728_v23  ;;  %v2747_v16 = vld [vmem:[#allocation6 + $0x1c0] sm:$0xff]   ;;  %v2749_v21 = vld [vmem:[#allocation6 + $0x1c8] sm:$0xff]   ;;  %v3431_v23 = vpack.c.bf16 %v358_v15, %v357_v14  ;;  %v2753_v31 = vld [vmem:[#allocation6 + $0x1d0] sm:$0xff]  }
  0xd2   : > { %2291 = vmatprep.subr.bf16.mxu1 %v2731_v26  ;;  %v2748_v19 = vld [vmem:[#allocation6 + $0x180] sm:$0xff]   ;;  %v2750_v24 = vld [vmem:[#allocation6 + $0x188] sm:$0xff]   ;;  %v3433_v26 = vpack.c.bf16 %v388_v18, %v387_v17  ;;  %v2048_v35 = vld [vmem:[%s3374_s6 + $0x90] sm:$0xff] }
  0xd3   : > { %2228 = vmatpush3.bf16.msra.mxu0 %v2730_v25  ;;  %v2047_v22 = vld [vmem:[%s3374_s6 + $0x80] sm:$0xff]  ;;  %v2751_v25 = vld [vmem:[#allocation6 + $0x168] sm:$0xff]   ;;  %v2755_v36 = vld [vmem:[#allocation6 + $0x1d8] sm:$0xff]  }
  0xd4   : > { %2229 = vmatprep.subr.bf16.mxu0 %v2733_v28  ;;  %v3436_v28 = vpack.c.bf16 %v2047_v22, %v2046_v20  ;;  %v389_v32 = vld [vmem:[%s3374_s6 + $0x62] sm:$0xff]  ;;  %v390_v33 = vld [vmem:[%s3374_s6 + $0x6a] sm:$0xff]  ;;  %v2756_v39 = vld [vmem:[#allocation6 + $0x198] sm:$0xff]  }
  0xd5   : > { %2292 = vmatpush3.bf16.msra.mxu1 %v2732_v27  ;;  %v2752_v27 = vld [vmem:[#allocation6 + $0x128] sm:$0xff]   ;;  %v2757_v40 = vld [vmem:[#allocation6 + $0x170] sm:$0xff]   ;;  %v362_v45 = vld [vmem:[%s3374_s6 + $0x99] sm:$0xff] }
  0xd6   : > { %2293 = vmatprep.subr.bf16.mxu1 %v2735_v30  ;;  %v360_v30 = vld [vmem:[%s3374_s6 + $0x81] sm:$0xff]  ;;  %v361_v44 = vld [vmem:[%s3374_s6 + $0x91] sm:$0xff] }
  0xd7   : > { %2230 = vmatpush3.bf16.msra.mxu0 %v2734_v29  ;;  %v359_v29 = vld [vmem:[%s3374_s6 + $0x79] sm:$0xff]  ;;  %v2050_v51 = vld [vmem:[%s3374_s6 + $0xa8] sm:$0xff]  ;;  %v2051_v54 = vld [vmem:[%s3374_s6 + $0xb0] sm:$0xff]  ;;  %v3463_v55 = vpack.c.bf16 %v362_v45, %v361_v44 }
  0xd8   : > { %2343 = vmatprep.subr.bf16.mxu0 %v2737_v38  ;;  %v3447_v38 = vpack.c.bf16 %v360_v30, %v359_v29  ;;  %v391_v47 = vld [vmem:[%s3374_s6 + $0x7a] sm:$0xff]  ;;  %v2762_v56 = vld [vmem:[#allocation6 + $0x1a8] sm:$0xff]   ;;  %v3468_v61 = vpack.c.bf16 %v2051_v54, %v2050_v51  ;;  %v364_v1 = vld [vmem:[%s3374_s6 + $0xb1] sm:$0xff] }
  0xd9   : > { %2294 = vmatpush3.bf16.msra.mxu1 %v2736_v34  ;;  %v2754_v34 = vld [vmem:[#allocation6 + $0x190] sm:$0xff]   ;;  %v2760_v50 = vld [vmem:[#allocation6 + $0x1a0] sm:$0xff]   ;;  %v2763_v57 = vld [vmem:[#allocation6 + $0x178] sm:$0xff]  }
  0xda   : > { %1299 = vmatmul.mubr.bf16.vlgmr.msra.gmra.mrb[0].mxu0 %v333_v37  ;;  %2407 = vmatprep.subr.bf16.mxu1 %v2747_v16  ;;  %v2049_v37 = vld [vmem:[%s3374_s6 + $0x98] sm:$0xff]  ;;  %v2765_v2 = vld [vmem:[#allocation6 + $0x1f0] sm:$0xff]   ;;  %v2052_v6 = vld [vmem:[%s3374_s6 + $0xc0] sm:$0xff] }
  0xdb   : > { %2344 = vmatpush3.bf16.msra.mxu0 %v2738_v42  ;;  %1306 = vmatprep.mubr.bf16.mxu0 %v3386_v48  ;;  %v2758_v42 = vld [vmem:[#allocation6 + $0x130] sm:$0xff]   ;;  %v3452_v43 = vpack.c.bf16 %v2049_v37, %v2048_v35  ;;  %v2764_v60 = vld [vmem:[#allocation6 + $0x138] sm:$0xff]   ;;  %v2053_v7 = vld [vmem:[%s3374_s6 + $0xc8] sm:$0xff] }
  0xdc   : > { %1396 = vmatmul.mubr.bf16.vlgmr.msra.gmra.mrb[0].mxu1 %v397_v46  ;;  %2345 = vmatprep.subr.bf16.mxu0 %v2739_v49  ;;  %v2759_v46 = vld [vmem:[#allocation6 + $0x1e0] sm:$0xff]   ;;  %v2766_v5 = vld [vmem:[#allocation6 + $0x1b0] sm:$0xff]   ;;  %v2767_v9 = vld [vmem:[#allocation6 + $0x1f8] sm:$0xff]   ;;  %v3484_v16 = vpack.c.bf16 %v2053_v7, %v2052_v6 }
  0xdd   : > { %1403 = vmatprep.mubr.bf16.mxu1 %v3390_v52  ;;  %2408 = vmatpush3.bf16.msra.mxu1 %v2748_v19  ;;  %v392_v49 = vld [vmem:[%s3374_s6 + $0x82] sm:$0xff]  ;;  %v395_v17 = vld [vmem:[%s3374_s6 + $0xaa] sm:$0xff]  ;;  %v396_v18 = vld [vmem:[%s3374_s6 + $0xb2] sm:$0xff] }
  0xde   : > { %2409 = vmatprep.subr.bf16.mxu1 %v2749_v21  ;;  %v2769_v14 = vld [vmem:[#allocation6 + $0x200] sm:$0xff]   ;;  %v3491_v19 = vpack.c.bf16 %v396_v18, %v395_v17  ;;  %v2770_v20 = vld [vmem:[#allocation6 + $0x208] sm:$0xff]   ;;  %v2771_v21 = vld [vmem:[#allocation6 + $0x210] sm:$0xff]  }
  0xdf   : > { %2346 = vmatpush3.bf16.msra.mxu0 %v2740_v53  ;;  %v2761_v53 = vld [vmem:[#allocation6 + $0x1e8] sm:$0xff]   ;;  %v2772_v22 = vld [vmem:[#allocation6 + $0x218] sm:$0xff]   ;;  %v3538_v37 = vld [vmem:[#allocation8] ss:$0 sm:$0xff] }
  0xe0   : > { %2347 = vmatprep.subr.bf16.mxu0 %v2741_v59  ;;  %v3465_v59 = vpack.c.bf16 %v392_v49, %v391_v47  ;;  %v2102_v30 = vld [vmem:[%s3374_s6 + $0xd8] sm:$0xff] }
  0xe1   : > { %2410 = vmatpush3.bf16.msra.mxu1 %v2750_v24  ;;  %v2085_v24 = vld [vmem:[%s3374_s6 + $0xca] sm:$0xff] }
  0xe2   : > { %1307 = vmatmul.mubr.bf16.gmra.mrb[4].mxu0 %v432_v41  ;;  %2411 = vmatprep.subr.bf16.mxu1 %v2753_v31  ;;  %v3449_v41 = vpack.c.bf16 %v390_v33, %v389_v32  ;;  %v2103_v31 = vld [vmem:[%s3374_s6 + $0xe0] sm:$0xff] }
  0xe3   : > { %1314 = vmatprep.mubr.bf16.mxu0 %v3398_v58  ;;  %2348 = vmatpush3.bf16.msra.mxu0 %v2742_v63  ;;  %v363_v63 = vld [vmem:[%s3374_s6 + $0xa9] sm:$0xff]  ;;  %v538_v32 = vpack.c.bf16 %v2103_v31, %v2102_v30  ;;  %v2134_v33 = vld [vmem:[%s3374_s6 + $0xda] sm:$0xff] }
  0xe4   : > { %1404 = vmatmul.mubr.bf16.gmra.mrb[4].mxu1 %v3402_v62  ;;  %2349 = vmatprep.subr.bf16.mxu0 %v2743_v3  ;;  %v393_v3 = vld [vmem:[%s3374_s6 + $0x92] sm:$0xff] }
  0xe5   : > { %1411 = vmatprep.mubr.bf16.mxu1 %v3404_v0  ;;  %2412 = vmatpush3.bf16.msra.mxu1 %v2754_v34  ;;  %v2135_v34 = vld [vmem:[%s3374_s6 + $0xe2] sm:$0xff] }
  0xe6   : > { %2413 = vmatprep.subr.bf16.mxu1 %v2755_v36  ;;  %v602_v35 = vpack.c.bf16 %v2135_v34, %v2134_v33 }
  0xe7   : > { %2350 = vmatpush3.bf16.msra.mxu0 %v2744_v4  ;;  %v394_v4 = vld [vmem:[%s3374_s6 + $0x9a] sm:$0xff] }
  0xe8   : > { %2351 = vmatprep.subr.bf16.mxu0 %v2745_v10  ;;  %v2768_v10 = vld [vmem:[#allocation6 + $0x1b8] sm:$0xff]   ;;  %v3481_v15 = vpack.c.bf16 %v394_v4, %v393_v3 }
  0xe9   : > { %2414 = vmatpush3.bf16.msra.mxu1 %v2756_v39 }
  0xea   : > { %1315 = vmatmul.mubr.bf16.gmra.mrb[8].mxu0 %v3390_v52  ;;  %2415 = vmatprep.subr.bf16.mxu1 %v2759_v46 }
  0xeb   : > { %1322 = vmatprep.mubr.bf16.mxu0 %v3414_v8  ;;  %2352 = vmatpush3.bf16.msra.mxu0 %v2746_v12  ;;  %v3479_v12 = vpack.c.bf16 %v364_v1, %v363_v63 }
  0xec   : > { %1412 = vmatmul.mubr.bf16.gmra.mrb[8].mxu1 %v3417_v11  ;;  %2353 = vmatprep.subr.bf16.mxu0 %v2751_v25 }
  0xed   : > { %1419 = vmatprep.mubr.bf16.mxu1 %v3420_v13  ;;  %2416 = vmatpush3.bf16.msra.mxu1 %v2760_v50 }
  0xee   : > { %2417 = vmatprep.subr.bf16.mxu1 %v2761_v53 }
  0xef   : > { %2354 = vmatpush3.bf16.msra.mxu0 %v2752_v27  ;;  %v2118_v27 = vld [vmem:[%s3374_s6 + $0xd9] sm:$0xff] }
  0xf0   : > { %2355 = vmatprep.subr.bf16.mxu0 %v2757_v40 }
  0xf1   : > { %2418 = vmatpush3.bf16.msra.mxu1 %v2762_v56 }
  0xf2   : > { %1323 = vmatmul.mubr.bf16.gmra.mrb[12].mxu0 %v3404_v0  ;;  %2419 = vmatprep.subr.bf16.mxu1 %v2765_v2 }
  0xf3   : > { %1330 = vmatprep.mubr.bf16.mxu0 %v3431_v23  ;;  %2356 = vmatpush3.bf16.msra.mxu0 %v2758_v42 }
  0xf4   : > { %1420 = vmatmul.mubr.bf16.gmra.mrb[12].mxu1 %v3433_v26  ;;  %2357 = vmatprep.subr.bf16.mxu0 %v2763_v57 }
  0xf5   : > { %1427 = vmatprep.mubr.bf16.mxu1 %v3436_v28  ;;  %2420 = vmatpush3.bf16.msra.mxu1 %v2766_v5 }
  0xf6   : > { %2421 = vmatprep.subr.bf16.mxu1 %v2767_v9 }
  0xf7   : > { %2358 = vmatpush3.bf16.msra.mxu0 %v2764_v60  ;;  %v3061_v60 = vmov 0.0  }
  0xf8   : > { %2496 = vmatprep.subr.bf16.mxu0 %v2769_v14 }
  0xf9   : > { %2422 = vmatpush3.bf16.msra.mxu1 %v2768_v10 }
  0xfa   : > { %1331 = vmatmul.mubr.bf16.gmra.mrb[16].mxu0 %v3420_v13  ;;  %2528 = vmatprep.subr.bf16.mxu1 %v3061_v60 }
  0xfb   : > { %1338 = vmatprep.mubr.bf16.mxu0 %v3447_v38 }
  0xfc   : > { %1428 = vmatmul.mubr.bf16.gmra.mrb[16].mxu1 %v3449_v41 }
  0xfd   : > { %1435 = vmatprep.mubr.bf16.mxu1 %v3452_v43 }
 0x102   : > { %1339 = vmatmul.mubr.bf16.gmra.mrb[20].mxu0 %v3436_v28 }
 0x103   : > { %1346 = vmatprep.mubr.bf16.mxu0 %v3463_v55 }
 0x104   : > { %1436 = vmatmul.mubr.bf16.gmra.mrb[20].mxu1 %v3465_v59 }
 0x105   : > { %1443 = vmatprep.mubr.bf16.mxu1 %v3468_v61 }
 0x10a   : > { %1347 = vmatmul.mubr.bf16.gmra.mrb[24].mxu0 %v3452_v43 }
 0x10b   : > { %1354 = vmatprep.mubr.bf16.mxu0 %v3479_v12 }
 0x10c   : > { %1444 = vmatmul.mubr.bf16.gmra.mrb[24].mxu1 %v3481_v15 }
 0x10d   : > { %1451 = vmatprep.mubr.bf16.mxu1 %v3484_v16 }
 0x112   : > { %1355 = vmatmul.mubr.bf16.gmra.mrb[28].mxu0 %v3468_v61 }
 0x113   : > { %1492 = vmatprep.mubr.bf16.mxu0 %v3402_v62  ;;  %v2773_v62 = vld [vmem:[#allocation6 + $0x220] sm:$0xff]  }
 0x114   : > { %1452 = vmatmul.mubr.bf16.gmra.mrb[28].mxu1 %v3491_v19 }
 0x115   : > { %1589 = vmatprep.mubr.bf16.mxu1 %v3398_v58 }
 0x11a   : > { %1493 = vmatmul.mubr.bf16.vlgmr.msra.gmra.mrb[32].mxu0 %v3386_v48  ;;  %v2774_v48 = vld [vmem:[#allocation6 + $0x228] sm:$0xff]  }
 0x11b   : > { %2497 = vmatpush3.bf16.msra.mxu0 %v2769_v14  ;;  %1500 = vmatprep.mubr.bf16.mxu0 %v3417_v11 }
 0x11c   : > { %2498 = vmatprep.subr.bf16.mxu0 %v2770_v20  ;;  %1590 = vmatmul.mubr.bf16.vlgmr.msra.gmra.mrb[32].mxu1 %v3390_v52  ;;  %v2775_v52 = vld [vmem:[#allocation6 + $0x230] sm:$0xff]  }
 0x11d   : > { %1597 = vmatprep.mubr.bf16.mxu1 %v3414_v8 }
 0x11f   : > { %2499 = vmatpush3.bf16.msra.mxu0 %v2770_v20 }
 0x120   : > { %2500 = vmatprep.subr.bf16.mxu0 %v2771_v21 }
 0x122   : > { %1501 = vmatmul.mubr.bf16.gmra.mrb[36].mxu0 %v3398_v58  ;;  %v2776_v58 = vld [vmem:[#allocation6 + $0x238] sm:$0xff]  }
 0x123   : > { %1508 = vmatprep.mubr.bf16.mxu0 %v3433_v26  ;;  %2501 = vmatpush3.bf16.msra.mxu0 %v2771_v21 }
 0x124   : > { %2502 = vmatprep.subr.bf16.mxu0 %v2772_v22  ;;  %1598 = vmatmul.mubr.bf16.gmra.mrb[36].mxu1 %v3404_v0  ;;  %v2116_v0 = vld [vmem:[%s3374_s6 + $0xc1] sm:$0xff] }
 0x125   : > { %1605 = vmatprep.mubr.bf16.mxu1 %v3431_v23 }
 0x127   : > { %2503 = vmatpush3.bf16.msra.mxu0 %v2772_v22 }
 0x128   : > { %2504 = vmatprep.subr.bf16.mxu0 %v2773_v62 }
 0x12a   : > { %1509 = vmatmul.mubr.bf16.gmra.mrb[40].mxu0 %v3414_v8  ;;  %v2117_v8 = vld [vmem:[%s3374_s6 + $0xc9] sm:$0xff] }
 0x12b   : > { %1516 = vmatprep.mubr.bf16.mxu0 %v3449_v41  ;;  %2505 = vmatpush3.bf16.msra.mxu0 %v2773_v62 }
 0x12c   : > { %2506 = vmatprep.subr.bf16.mxu0 %v2774_v48  ;;  %1606 = vmatmul.mubr.bf16.gmra.mrb[40].mxu1 %v3420_v13  ;;  %v569_v13 = vpack.c.bf16 %v2117_v8, %v2116_v0 }
 0x12d   : > { %1613 = vmatprep.mubr.bf16.mxu1 %v3447_v38 }
 0x12f   : > { %2507 = vmatpush3.bf16.msra.mxu0 %v2774_v48 }
 0x130   : > { %2508 = vmatprep.subr.bf16.mxu0 %v2775_v52 }
 0x132   : > { %1517 = vmatmul.mubr.bf16.gmra.mrb[44].mxu0 %v3431_v23  ;;  %v2084_v23 = vld [vmem:[%s3374_s6 + $0xc2] sm:$0xff] }
 0x133   : > { %1524 = vmatprep.mubr.bf16.mxu0 %v3465_v59  ;;  %2509 = vmatpush3.bf16.msra.mxu0 %v2775_v52  ;;  %v503_v25 = vpack.c.bf16 %v2085_v24, %v2084_v23 }
 0x134   : > { %2510 = vmatprep.subr.bf16.mxu0 %v2776_v58  ;;  %1614 = vmatmul.mubr.bf16.gmra.mrb[44].mxu1 %v3436_v28  ;;  %v2119_v28 = vld [vmem:[%s3374_s6 + $0xe1] sm:$0xff]  ;;  %s3064_s6 = smov [#allocation12]  }
 0x135   : > { %1621 = vmatprep.mubr.bf16.mxu1 %v3463_v55  ;;  %v570_v29 = vpack.c.bf16 %v2119_v28, %v2118_v27  ;;  %s2924_s7 = sshll.u32 %s3064_s6, 4  ;;  %s2925_s7 = int_to_ptr.vmem [resolvable:$false] %s2924_s7 }
 0x136   : > { %s2926_s10 = scalar_lea.vmem %s2925_s7, 512  ;;  %p2927_p13 = scmp.lt.s32.totalorder %s3664_s5, %s2925_s7 }
 0x137   : > { %2511 = vmatpush3.bf16.msra.mxu0 %v2776_v58  ;;  %p2928_p10 = scmp.lt.s32.totalorder %s2926_s10, %s2920_s2 }
 0x139   : > { %p2929_p11 = por %p2928_p10, %p2927_p13 }
 0x13a   : > { %1525 = vmatmul.mubr.bf16.gmra.mrb[48].mxu0 %v3447_v38 }
 0x13b   : > { %1532 = vmatprep.mubr.bf16.mxu0 %v3481_v15  ;;  %p2930_p5 = pnand %p2929_p11, %p2923_p6 }
 0x13c   : > { %1622 = vmatmul.mubr.bf16.gmra.mrb[48].mxu1 %v3452_v43 }
 0x13d   : > { %1629 = vmatprep.mubr.bf16.mxu1 %v3479_v12 }
 0x142   : > { %1533 = vmatmul.mubr.bf16.gmra.mrb[52].mxu0 %v3463_v55 }
 0x143   : > { %1540 = vmatprep.mubr.bf16.mxu0 %v3491_v19 }
 0x144   : > { %1630 = vmatmul.mubr.bf16.gmra.mrb[52].mxu1 %v3468_v61 }
 0x145   : > { %1637 = vmatprep.mubr.bf16.mxu1 %v569_v13 }
 0x14a   : > { %1541 = vmatmul.mubr.bf16.gmra.mrb[56].mxu0 %v3479_v12 }
 0x14b   : > { %1548 = vmatprep.mubr.bf16.mxu0 %v503_v25 }
 0x14c   : > { %1638 = vmatmul.mubr.bf16.gmra.mrb[56].mxu1 %v3484_v16 }
 0x14d   : > { %1645 = vmatprep.mubr.bf16.mxu1 %v570_v29 }
 0x152   : > { %1549 = vmatmul.mubr.bf16.gmra.mrb[60].mxu0 %v569_v13 }
 0x153   : > { %2512 = vmatprep.mubr.bf16.mxu0 %v3417_v11 }
 0x154   : > { %1646 = vmatmul.mubr.bf16.gmra.mrb[60].mxu1 %v538_v32 }
 0x155   : > { %2544 = vmatprep.mubr.msk.bf16.mxu1 %vm3062_vm0, %v3061_v60 }
 0x15a   : > { %2513 = vmatmul.mubr.bf16.vlgmr.msra.gmra.mrb[64].mxu0 %v3433_v26 }
 0x15b   : > { %2516 = vmatprep.mubr.bf16.mxu0 %v3449_v41 }
 0x162   : > { %2517 = vmatmul.mubr.bf16.gmra.mrb[68].mxu0 %v3465_v59 }
 0x163   : > { %2520 = vmatprep.mubr.bf16.mxu0 %v3481_v15 }
 0x16a   : > { %2521 = vmatmul.mubr.bf16.gmra.mrb[72].mxu0 %v3491_v19 }
 0x16b   : > { %2524 = vmatprep.mubr.bf16.mxu0 %v503_v25 }
 0x172   : > { %2525 = vmatmul.mubr.bf16.gmra.mrb[76].mxu0 %v602_v35 }
 0x1ad   : > { %v2231_v36 = vpop.f32.mrb[0].mxu0 }
 0x1ae   : > { %v2232_v11 = vpop.f32.mrb[1].mxu0 }
 0x1af   : > { %v2233_v38 = vadd.f32 %v2232_v11, %v2231_v36  ;;  %v2234_v39 = vpop.f32.mrb[2].mxu0  ;;  %v2295_v26 = vpop.f32.mrb[0].mxu1 }
 0x1b0   : > { %v2235_v40 = vpop.f32.mrb[3].mxu0  ;;  %v2296_v43 = vpop.f32.mrb[1].mxu1 }
 0x1b1   : > { %v1301_v41 = vadd.f32 %v2233_v38, %v3538_v37  ;;  %v2236_v42 = vadd.f32 %v2235_v40, %v2234_v39  ;;  %v2297_v44 = vadd.f32 %v2296_v43, %v2295_v26  ;;  %v2298_v45 = vpop.f32.mrb[2].mxu1 }
 0x1b2   : > { %v2299_v47 = vpop.f32.mrb[3].mxu1 }
 0x1b3   : > { %v1304_v46 = vadd.f32 %v2236_v42, %v3538_v37  ;;  %v3542_v49 = vadd.f32 %v2297_v44, %v1301_v41  ;;  %v2300_v50 = vadd.f32 %v2299_v47, %v2298_v45 }
 0x1b5   : > { %v2237_v51 = vpop.f32.mrb[4].mxu0  ;;  %v3544_v53 = vadd.f32 %v2300_v50, %v1304_v46 }
 0x1b6   : > { %v2238_v54 = vpop.f32.mrb[5].mxu0 }
 0x1b7   : > { %v2239_v55 = vadd.f32 %v2238_v54, %v2237_v51  ;;  %v2240_v56 = vpop.f32.mrb[6].mxu0  ;;  %v2301_v57 = vpop.f32.mrb[4].mxu1 }
 0x1b8   : > { %v2241_v59 = vpop.f32.mrb[7].mxu0  ;;  %v2302_v1 = vpop.f32.mrb[5].mxu1 }
 0x1b9   : > { %v1309_v61 = vadd.f32 %v2239_v55, %v3538_v37  ;;  %v2242_v63 = vadd.f32 %v2241_v59, %v2240_v56  ;;  %v2303_v2 = vadd.f32 %v2302_v1, %v2301_v57  ;;  %v2304_v3 = vpop.f32.mrb[6].mxu1 }
 0x1ba   : > { %v2305_v5 = vpop.f32.mrb[7].mxu1 }
 0x1bb   : > { %v1312_v4 = vadd.f32 %v2242_v63, %v3538_v37  ;;  %v3549_v6 = vadd.f32 %v2303_v2, %v1309_v61  ;;  %v2306_v7 = vadd.f32 %v2305_v5, %v2304_v3 }
 0x1bd   : > { %v2243_v9 = vpop.f32.mrb[8].mxu0  ;;  %v3551_v10 = vadd.f32 %v2306_v7, %v1312_v4 }
 0x1be   : > { %v2244_v12 = vpop.f32.mrb[9].mxu0 }
 0x1bf   : > { %v2245_v14 = vadd.f32 %v2244_v12, %v2243_v9  ;;  %v2246_v15 = vpop.f32.mrb[10].mxu0  ;;  %v2307_v16 = vpop.f32.mrb[8].mxu1 }
 0x1c0   : > { %v2247_v17 = vpop.f32.mrb[11].mxu0  ;;  %v2308_v20 = vpop.f32.mrb[9].mxu1 }
 0x1c1   : > { %v1317_v18 = vadd.f32 %v2245_v14, %v3538_v37  ;;  %v2248_v19 = vadd.f32 %v2247_v17, %v2246_v15  ;;  %v2309_v21 = vadd.f32 %v2308_v20, %v2307_v16  ;;  %v2310_v22 = vpop.f32.mrb[10].mxu1 }
 0x1c2   : > { %v2311_v48 = vpop.f32.mrb[11].mxu1 }
 0x1c3   : > { %v1320_v62 = vadd.f32 %v2248_v19, %v3538_v37  ;;  %v3555_v52 = vadd.f32 %v2309_v21, %v1317_v18  ;;  %v2312_v58 = vadd.f32 %v2311_v48, %v2310_v22 }
 0x1c5   : > { %v2249_v0 = vpop.f32.mrb[12].mxu0  ;;  %v3557_v8 = vadd.f32 %v2312_v58, %v1320_v62 }
 0x1c6   : > { %v2250_v13 = vpop.f32.mrb[13].mxu0 }
 0x1c7   : > { %v2251_v23 = vadd.f32 %v2250_v13, %v2249_v0  ;;  %v2252_v24 = vpop.f32.mrb[14].mxu0  ;;  %v2313_v25 = vpop.f32.mrb[12].mxu1 }
 0x1c8   : > { %v2253_v27 = vpop.f32.mrb[15].mxu0  ;;  %v2314_v30 = vpop.f32.mrb[13].mxu1 }
 0x1c9   : > { %v1325_v28 = vadd.f32 %v2251_v23, %v3538_v37  ;;  %v2254_v29 = vadd.f32 %v2253_v27, %v2252_v24  ;;  %v2315_v31 = vadd.f32 %v2314_v30, %v2313_v25  ;;  %v2316_v32 = vpop.f32.mrb[14].mxu1 }
 0x1ca   : > { %v2317_v34 = vpop.f32.mrb[15].mxu1 }
 0x1cb   : > { %v1328_v33 = vadd.f32 %v2254_v29, %v3538_v37  ;;  %v3561_v35 = vadd.f32 %v2315_v31, %v1325_v28  ;;  %v2318_v36 = vadd.f32 %v2317_v34, %v2316_v32 }
 0x1cd   : > { %v2255_v11 = vpop.f32.mrb[16].mxu0  ;;  %v3563_v38 = vadd.f32 %v2318_v36, %v1328_v33 }
 0x1ce   : > { %v2256_v39 = vpop.f32.mrb[17].mxu0 }
 0x1cf   : > { %v2257_v26 = vadd.f32 %v2256_v39, %v2255_v11  ;;  %v2258_v40 = vpop.f32.mrb[18].mxu0  ;;  %v2319_v41 = vpop.f32.mrb[16].mxu1 }
 0x1d0   : > { %v2259_v42 = vpop.f32.mrb[19].mxu0  ;;  %v2320_v45 = vpop.f32.mrb[17].mxu1 }
 0x1d1   : > { %v1333_v43 = vadd.f32 %v2257_v26, %v3538_v37  ;;  %v2260_v44 = vadd.f32 %v2259_v42, %v2258_v40  ;;  %v2321_v46 = vadd.f32 %v2320_v45, %v2319_v41  ;;  %v2322_v47 = vpop.f32.mrb[18].mxu1 }
 0x1d2   : > { %v2323_v51 = vpop.f32.mrb[19].mxu1 }
 0x1d3   : > { %v1336_v50 = vadd.f32 %v2260_v44, %v3538_v37  ;;  %v3567_v54 = vadd.f32 %v2321_v46, %v1333_v43  ;;  %v2324_v55 = vadd.f32 %v2323_v51, %v2322_v47 }
 0x1d5   : > { %v2261_v56 = vpop.f32.mrb[20].mxu0  ;;  %v3569_v57 = vadd.f32 %v2324_v55, %v1336_v50 }
 0x1d6   : > { %v2262_v59 = vpop.f32.mrb[21].mxu0 }
 0x1d7   : > { %v2263_v61 = vadd.f32 %v2262_v59, %v2261_v56  ;;  %v2264_v63 = vpop.f32.mrb[22].mxu0  ;;  %v2325_v1 = vpop.f32.mrb[20].mxu1 }
 0x1d8   : > { %v2265_v2 = vpop.f32.mrb[23].mxu0  ;;  %v2326_v5 = vpop.f32.mrb[21].mxu1 }
 0x1d9   : > { %v1341_v3 = vadd.f32 %v2263_v61, %v3538_v37  ;;  %v2266_v4 = vadd.f32 %v2265_v2, %v2264_v63  ;;  %v2327_v7 = vadd.f32 %v2326_v5, %v2325_v1  ;;  %v2328_v9 = vpop.f32.mrb[22].mxu1 }
 0x1da   : > { %v2329_v14 = vpop.f32.mrb[23].mxu1 }
 0x1db   : > { %v1344_v12 = vadd.f32 %v2266_v4, %v3538_v37  ;;  %v3573_v15 = vadd.f32 %v2327_v7, %v1341_v3  ;;  %v2330_v16 = vadd.f32 %v2329_v14, %v2328_v9 }
 0x1dd   : > { %v2267_v17 = vpop.f32.mrb[24].mxu0  ;;  %v3575_v18 = vadd.f32 %v2330_v16, %v1344_v12 }
 0x1de   : > { %v2268_v19 = vpop.f32.mrb[25].mxu0 }
 0x1df   : > { %v2269_v20 = vadd.f32 %v2268_v19, %v2267_v17  ;;  %v2270_v21 = vpop.f32.mrb[26].mxu0  ;;  %v2331_v22 = vpop.f32.mrb[24].mxu1 }
 0x1e0   : > { %v2271_v62 = vpop.f32.mrb[27].mxu0  ;;  %v2332_v0 = vpop.f32.mrb[25].mxu1 }
 0x1e1   : > { %v1349_v48 = vadd.f32 %v2269_v20, %v3538_v37  ;;  %v2272_v58 = vadd.f32 %v2271_v62, %v2270_v21  ;;  %v2333_v13 = vadd.f32 %v2332_v0, %v2331_v22  ;;  %v2334_v23 = vpop.f32.mrb[26].mxu1  ;;  %v3063_v21 = vmov 0   ;;  %v1810_v0 = vld [vmem:[#allocation11 + $0x8] sm:$0x7f] }
 0x1e2   : > { %v2335_v25 = vpop.f32.mrb[27].mxu1  ;;  %2704 = vset.pattern.permute.xlu0 %v3063_v21 }
 0x1e3   : > { %v1352_v24 = vadd.f32 %v2272_v58, %v3538_v37  ;;  %v3579_v27 = vadd.f32 %v2333_v13, %v1349_v48  ;;  %v2336_v28 = vadd.f32 %v2335_v25, %v2334_v23 }
 0x1e5   : > { %v2273_v29 = vpop.f32.mrb[28].mxu0  ;;  %v3581_v30 = vadd.f32 %v2336_v28, %v1352_v24 }
 0x1e6   : > { %v2274_v31 = vpop.f32.mrb[29].mxu0 }
 0x1e7   : > { %v2275_v32 = vadd.f32 %v2274_v31, %v2273_v29  ;;  %v2276_v33 = vpop.f32.mrb[30].mxu0  ;;  %v2337_v34 = vpop.f32.mrb[28].mxu1 }
 0x1e8   : > { %v2277_v36 = vpop.f32.mrb[31].mxu0  ;;  %v2338_v26 = vpop.f32.mrb[29].mxu1 }
 0x1e9   : > { %v1357_v11 = vadd.f32 %v2275_v32, %v3538_v37  ;;  %v2278_v39 = vadd.f32 %v2277_v36, %v2276_v33  ;;  %v2339_v40 = vadd.f32 %v2338_v26, %v2337_v34  ;;  %v2340_v41 = vpop.f32.mrb[30].mxu1 }
 0x1ea   : > { %v2341_v43 = vpop.f32.mrb[31].mxu1 }
 0x1eb   : > { %v1360_v42 = vadd.f32 %v2278_v39, %v3538_v37  ;;  %v3585_v44 = vadd.f32 %v2339_v40, %v1357_v11  ;;  %v2342_v45 = vadd.f32 %v2341_v43, %v2340_v41 }
 0x1ed   : > { %v2359_v46 = vpop.f32.mrb[32].mxu0  ;;  %v3587_v47 = vadd.f32 %v2342_v45, %v1360_v42 }
 0x1ee   : > { %v2360_v50 = vpop.f32.mrb[33].mxu0 }
 0x1ef   : > { %v2361_v51 = vadd.f32 %v2360_v50, %v2359_v46  ;;  %v2362_v55 = vpop.f32.mrb[34].mxu0  ;;  %v2423_v56 = vpop.f32.mrb[32].mxu1 }
 0x1f0   : > { %v2363_v59 = vpop.f32.mrb[35].mxu0  ;;  %v2424_v1 = vpop.f32.mrb[33].mxu1 }
 0x1f1   : > { %v1495_v61 = vadd.f32 %v2361_v51, %v3542_v49  ;;  %v2364_v63 = vadd.f32 %v2363_v59, %v2362_v55  ;;  %v2425_v37 = vadd.f32 %v2424_v1, %v2423_v56  ;;  %v2426_v2 = vpop.f32.mrb[34].mxu1  ;;  %v1809_v49 = vld [vmem:[#allocation11] sm:$0xff] }
 0x1f2   : > { %v2427_v4 = vpop.f32.mrb[35].mxu1  ;;  %1813 = vperm.xlu0 %2704, %v1809_v49  }
 0x1f3   : > { %v1498_v3 = vadd.f32 %v2364_v63, %v3544_v53  ;;  %v2428_v5 = vadd.f32 %v2427_v4, %v2426_v2  ;;  %v3592_v7 = vadd.f32 %v2425_v37, %v1495_v61 }
 0x1f5   : > { %v2365_v9 = vpop.f32.mrb[36].mxu0  ;;  %v3594_v14 = vadd.f32 %v2428_v5, %v1498_v3 }
 0x1f6   : > { %v2366_v12 = vpop.f32.mrb[37].mxu0  ;;  %1818 = vperm.xlu0 %2704, %v1810_v0  }
 0x1f7   : > { %v2367_v16 = vadd.f32 %v2366_v12, %v2365_v9  ;;  %v2368_v17 = vpop.f32.mrb[38].mxu0  ;;  %v2429_v19 = vpop.f32.mrb[36].mxu1 }
 0x1f8   : > { %v2369_v20 = vpop.f32.mrb[39].mxu0  ;;  %v2430_v48 = vpop.f32.mrb[37].mxu1 }
 0x1f9   : > { %v1503_v22 = vadd.f32 %v2367_v16, %v3549_v6  ;;  %v2370_v62 = vadd.f32 %v2369_v20, %v2368_v17  ;;  %v2431_v53 = vadd.f32 %v2430_v48, %v2429_v19  ;;  %v2432_v58 = vpop.f32.mrb[38].mxu1 }
 0x1fa   : > { %v2433_v23 = vpop.f32.mrb[39].mxu1 }
 0x1fb   : > { %v1506_v13 = vadd.f32 %v2370_v62, %v3551_v10  ;;  %v2434_v24 = vadd.f32 %v2433_v23, %v2432_v58  ;;  %v3598_v25 = vadd.f32 %v2431_v53, %v1503_v22 }
 0x1fd   : > { %v2371_v28 = vpop.f32.mrb[40].mxu0  ;;  %v3600_v31 = vadd.f32 %v2434_v24, %v1506_v13 }
 0x1fe   : > { %v2372_v29 = vpop.f32.mrb[41].mxu0 }
 0x1ff   : > { %v2373_v32 = vadd.f32 %v2372_v29, %v2371_v28  ;;  %v2374_v33 = vpop.f32.mrb[42].mxu0  ;;  %v2435_v6 = vpop.f32.mrb[40].mxu1 }
 0x200   : > { %v2375_v34 = vpop.f32.mrb[43].mxu0  ;;  %v2436_v39 = vpop.f32.mrb[41].mxu1 }
 0x201   : > { %v1511_v36 = vadd.f32 %v2373_v32, %v3555_v52  ;;  %v2376_v11 = vadd.f32 %v2375_v34, %v2374_v33  ;;  %v2437_v26 = vadd.f32 %v2436_v39, %v2435_v6  ;;  %v2438_v40 = vpop.f32.mrb[42].mxu1 }
 0x202   : > { %v2439_v41 = vpop.f32.mrb[43].mxu1 }
 0x203   : > { %v1514_v10 = vadd.f32 %v2376_v11, %v3557_v8  ;;  %v2440_v42 = vadd.f32 %v2439_v41, %v2438_v40  ;;  %v3604_v43 = vadd.f32 %v2437_v26, %v1511_v36 }
 0x205   : > { %v2377_v45 = vpop.f32.mrb[44].mxu0  ;;  %v3606_v50 = vadd.f32 %v2440_v42, %v1514_v10 }
 0x206   : > { %v2378_v46 = vpop.f32.mrb[45].mxu0 }
 0x207   : > { %v2379_v51 = vadd.f32 %v2378_v46, %v2377_v45  ;;  %v2380_v55 = vpop.f32.mrb[46].mxu0  ;;  %v2441_v56 = vpop.f32.mrb[44].mxu1 }
 0x208   : > { %v2381_v59 = vpop.f32.mrb[47].mxu0  ;;  %v2442_v63 = vpop.f32.mrb[45].mxu1 }
 0x209   : > { %v1519_v52 = vadd.f32 %v2379_v51, %v3561_v35  ;;  %v2382_v61 = vadd.f32 %v2381_v59, %v2380_v55  ;;  %v2443_v1 = vadd.f32 %v2442_v63, %v2441_v56  ;;  %v2444_v37 = vpop.f32.mrb[46].mxu1 }
 0x20a   : > { %v2445_v2 = vpop.f32.mrb[47].mxu1 }
 0x20b   : > { %v1522_v8 = vadd.f32 %v2382_v61, %v3563_v38  ;;  %v2446_v3 = vadd.f32 %v2445_v2, %v2444_v37  ;;  %v3610_v4 = vadd.f32 %v2443_v1, %v1519_v52 }
 0x20d   : > { %v2383_v5 = vpop.f32.mrb[48].mxu0  ;;  %v3612_v12 = vadd.f32 %v2446_v3, %v1522_v8 }
 0x20e   : > { %v2384_v9 = vpop.f32.mrb[49].mxu0 }
 0x20f   : > { %v2385_v16 = vadd.f32 %v2384_v9, %v2383_v5  ;;  %v2386_v17 = vpop.f32.mrb[50].mxu0  ;;  %v2447_v49 = vpop.f32.mrb[48].mxu1 }
 0x210   : > { %v2387_v19 = vpop.f32.mrb[51].mxu0  ;;  %v2448_v21 = vpop.f32.mrb[49].mxu1 }
 0x211   : > { %v1527_v35 = vadd.f32 %v2385_v16, %v3567_v54  ;;  %v2388_v20 = vadd.f32 %v2387_v19, %v2386_v17  ;;  %v2449_v22 = vadd.f32 %v2448_v21, %v2447_v49  ;;  %v2450_v62 = vpop.f32.mrb[50].mxu1 }
 0x212   : > { %v2451_v48 = vpop.f32.mrb[51].mxu1 }
 0x213   : > { %v1530_v38 = vadd.f32 %v2388_v20, %v3569_v57  ;;  %v2452_v53 = vadd.f32 %v2451_v48, %v2450_v62  ;;  %v3616_v58 = vadd.f32 %v2449_v22, %v1527_v35 }
 0x215   : > { %v2389_v0 = vpop.f32.mrb[52].mxu0  ;;  %v3618_v23 = vadd.f32 %v2452_v53, %v1530_v38 }
 0x216   : > { %v2390_v13 = vpop.f32.mrb[53].mxu0 }
 0x217   : > { %v2391_v24 = vadd.f32 %v2390_v13, %v2389_v0  ;;  %v2392_v28 = vpop.f32.mrb[54].mxu0  ;;  %v2453_v29 = vpop.f32.mrb[52].mxu1 }
 0x218   : > { %v2393_v32 = vpop.f32.mrb[55].mxu0  ;;  %v2454_v6 = vpop.f32.mrb[53].mxu1 }
 0x219   : > { %v1535_v54 = vadd.f32 %v2391_v24, %v3573_v15  ;;  %v2394_v33 = vadd.f32 %v2393_v32, %v2392_v28  ;;  %v2455_v34 = vadd.f32 %v2454_v6, %v2453_v29  ;;  %v2456_v36 = vpop.f32.mrb[54].mxu1 }
 0x21a   : > { %v2457_v11 = vpop.f32.mrb[55].mxu1 }
 0x21b   : > { %v1538_v57 = vadd.f32 %v2394_v33, %v3575_v18  ;;  %v2458_v39 = vadd.f32 %v2457_v11, %v2456_v36  ;;  %v3622_v26 = vadd.f32 %v2455_v34, %v1535_v54 }
 0x21d   : > { %v2395_v40 = vpop.f32.mrb[56].mxu0  ;;  %v3624_v41 = vadd.f32 %v2458_v39, %v1538_v57 }
 0x21e   : > { %v2396_v10 = vpop.f32.mrb[57].mxu0 }
 0x21f   : > { %v2397_v42 = vadd.f32 %v2396_v10, %v2395_v40  ;;  %v2398_v45 = vpop.f32.mrb[58].mxu0  ;;  %v2459_v46 = vpop.f32.mrb[56].mxu1 }
 0x220   : > { %v2399_v51 = vpop.f32.mrb[59].mxu0  ;;  %v2460_v56 = vpop.f32.mrb[57].mxu1 }
 0x221   : > { %v1543_v15 = vadd.f32 %v2397_v42, %v3579_v27  ;;  %v2400_v55 = vadd.f32 %v2399_v51, %v2398_v45  ;;  %v2461_v59 = vadd.f32 %v2460_v56, %v2459_v46  ;;  %v2462_v52 = vpop.f32.mrb[58].mxu1 }
 0x222   : > { %v2463_v61 = vpop.f32.mrb[59].mxu1 }
 0x223   : > { %v1546_v18 = vadd.f32 %v2400_v55, %v3581_v30  ;;  %v2464_v63 = vadd.f32 %v2463_v61, %v2462_v52  ;;  %v3628_v1 = vadd.f32 %v2461_v59, %v1543_v15 }
 0x225   : > { %v2401_v37 = vpop.f32.mrb[60].mxu0  ;;  %v3630_v2 = vadd.f32 %v2464_v63, %v1546_v18 }
 0x226   : > { %v2402_v8 = vpop.f32.mrb[61].mxu0 }
 0x227   : > { %v2403_v3 = vadd.f32 %v2402_v8, %v2401_v37  ;;  %v2404_v5 = vpop.f32.mrb[62].mxu0  ;;  %v2465_v9 = vpop.f32.mrb[60].mxu1 }
 0x228   : > { %v2405_v16 = vpop.f32.mrb[63].mxu0  ;;  %v2466_v49 = vpop.f32.mrb[61].mxu1 }
 0x229   : > { %v1551_v27 = vadd.f32 %v2403_v3, %v3585_v44  ;;  %v2406_v17 = vadd.f32 %v2405_v16, %v2404_v5  ;;  %v2467_v19 = vadd.f32 %v2466_v49, %v2465_v9  ;;  %v2468_v35 = vpop.f32.mrb[62].mxu1 }
 0x22a   : > { %v2469_v20 = vpop.f32.mrb[63].mxu1 }
 0x22b   : > { %v1554_v30 = vadd.f32 %v2406_v17, %v3587_v47  ;;  %v2470_v21 = vadd.f32 %v2469_v20, %v2468_v35  ;;  %v3634_v22 = vadd.f32 %v2467_v19, %v1551_v27 }
 0x22d   : > { %v2514_v62 = vpop.f32.mrb[64].mxu0  ;;  %v3637_v53 = vadd.f32 %v2470_v21, %v1554_v30 }
 0x22e   : > { %v1697_v38 = vadd.f32 %v2514_v62, %v3598_v25  ;;  %v1688_v48 = vpop.f32.mrb[65].mxu0 }
 0x22f   : > { %v1689_v0 = vadd.f32 %v1688_v48, %v3592_v7  ;;  %v2515_v13 = vpop.f32.mrb[66].mxu0 }
 0x230   : > { %v1769_v44 = vmul.f32 0.1, %v1697_v38  ;;  %v1700_v24 = vadd.f32 %v2515_v13, %v3600_v31  ;;  %v1691_v28 = vpop.f32.mrb[67].mxu0  ;;  %vm1753_vm1 = vcmp.gt.f32.partialorder %v1697_v38, 0.0 }
 0x231   : > { %v1767_v29 = vmul.f32 0.1, %v1689_v0  ;;  %v1692_v47 = vadd.f32 %v1691_v28, %v3594_v14  ;;  %vm1751_vm2 = vcmp.gt.f32.partialorder %v1689_v0, 0.0 }
 0x232   : > { %vm1754_vm3 = vcmp.gt.f32.partialorder %v1700_v24, 0.0  ;;  %v1770_v32 = vmul.f32 0.1, %v1700_v24  ;;  %v1785_v25 = vsel %vm1753_vm1, %v1697_v38, %v1769_v44 }
 0x233   : > { %vm1752_vm4 = vcmp.gt.f32.partialorder %v1692_v47, 0.0  ;;  %v1768_v54 = vmul.f32 0.1, %v1692_v47  ;;  %v1783_v6 = vsel %vm1751_vm2, %v1689_v0, %v1767_v29 }
 0x234   : > { %v1786_v33 = vsel %vm1754_vm3, %v1700_v24, %v1770_v32 }
 0x235   : > { %v1800_v34 = vpack.c.bf16 %v1786_v33, %v1785_v25  ;;  %v1784_v36 = vsel %vm1752_vm4, %v1692_v47, %v1768_v54  ;;  %v2518_v7 = vpop.f32.mrb[68].mxu0 }
 0x236   : > { %v1799_v57 = vpack.c.bf16 %v1784_v36, %v1783_v6  ;;  %v1713_v11 = vadd.f32 %v2518_v7, %v3610_v4  ;;  %v1704_v31 = vpop.f32.mrb[69].mxu0 }
 0x237   : > { %v1705_v39 = vadd.f32 %v1704_v31, %v3604_v43  ;;  %v2519_v40 = vpop.f32.mrb[70].mxu0 }
 0x238   : > { %v1773_v10 = vmul.f32 0.1, %v1713_v11  ;;  %v1716_v14 = vadd.f32 %v2519_v40, %v3612_v12  ;;  %v1707_v42 = vpop.f32.mrb[71].mxu0  ;;  %2529 = vmatpush3.bf16.xpose.msra.mxu1 %v1799_v57  ;;  %vm1757_vm5 = vcmp.gt.f32.partialorder %v1713_v11, 0.0 }
 0x239   : > { %v1771_v45 = vmul.f32 0.1, %v1705_v39  ;;  %v1708_v46 = vadd.f32 %v1707_v42, %v3606_v50  ;;  %2530 = vmatprep.subr.bf16.mxu1 %v3061_v60  ;;  %vm1755_vm6 = vcmp.gt.f32.partialorder %v1705_v39, 0.0 }
 0x23a   : > { %vm1758_vm7 = vcmp.gt.f32.partialorder %v1716_v14, 0.0  ;;  %v1774_v51 = vmul.f32 0.1, %v1716_v14  ;;  %v1789_v15 = vsel %vm1757_vm5, %v1713_v11, %v1773_v10 }
 0x23b   : > { %vm1756_vm8 = vcmp.gt.f32.partialorder %v1708_v46, 0.0  ;;  %v1772_v4 = vmul.f32 0.1, %v1708_v46  ;;  %v1787_v43 = vsel %vm1755_vm6, %v1705_v39, %v1771_v45 }
 0x23c   : > { %v1790_v55 = vsel %vm1758_vm7, %v1716_v14, %v1774_v51 }
 0x23d   : > { %v1802_v56 = vpack.c.bf16 %v1790_v55, %v1789_v15  ;;  %v1788_v59 = vsel %vm1756_vm8, %v1708_v46, %v1772_v4  ;;  %v2522_v52 = vpop.f32.mrb[72].mxu0 }
 0x23e   : > { %v1801_v12 = vpack.c.bf16 %v1788_v59, %v1787_v43  ;;  %v1729_v18 = vadd.f32 %v2522_v52, %v3622_v26  ;;  %v1720_v61 = vpop.f32.mrb[73].mxu0 }
 0x23f   : > { %v1721_v63 = vadd.f32 %v1720_v61, %v3616_v58  ;;  %v2523_v50 = vpop.f32.mrb[74].mxu0 }
 0x240   : > { %v1777_v37 = vmul.f32 0.1, %v1729_v18  ;;  %v1732_v8 = vadd.f32 %v2523_v50, %v3624_v41  ;;  %v1723_v3 = vpop.f32.mrb[75].mxu0  ;;  %2531 = vmatpush3.bf16.xpose.msra.mxu1 %v1800_v34  ;;  %vm1761_vm9 = vcmp.gt.f32.partialorder %v1729_v18, 0.0 }
 0x241   : > { %v1775_v5 = vmul.f32 0.1, %v1721_v63  ;;  %v1724_v9 = vadd.f32 %v1723_v3, %v3618_v23  ;;  %2532 = vmatprep.subr.bf16.mxu1 %v3061_v60  ;;  %vm1759_vm10 = vcmp.gt.f32.partialorder %v1721_v63, 0.0 }
 0x242   : > { %vm1762_vm11 = vcmp.gt.f32.partialorder %v1732_v8, 0.0  ;;  %v1778_v16 = vmul.f32 0.1, %v1732_v8  ;;  %v1793_v27 = vsel %vm1761_vm9, %v1729_v18, %v1777_v37 }
 0x243   : > { %vm1760_vm12 = vcmp.gt.f32.partialorder %v1724_v9, 0.0  ;;  %v1776_v26 = vmul.f32 0.1, %v1724_v9  ;;  %v1791_v58 = vsel %vm1759_vm10, %v1721_v63, %v1775_v5 }
 0x244   : > { %v1794_v17 = vsel %vm1762_vm11, %v1732_v8, %v1778_v16 }
 0x245   : > { %v1804_v49 = vpack.c.bf16 %v1794_v17, %v1793_v27  ;;  %v1792_v19 = vsel %vm1760_vm12, %v1724_v9, %v1776_v26  ;;  %v2526_v35 = vpop.f32.mrb[76].mxu0 }
 0x246   : > { %v1803_v41 = vpack.c.bf16 %v1792_v19, %v1791_v58  ;;  %v1745_v30 = vadd.f32 %v2526_v35, %v3634_v22  ;;  %v1736_v20 = vpop.f32.mrb[77].mxu0 }
 0x247   : > { %v1737_v21 = vadd.f32 %v1736_v20, %v3628_v1  ;;  %v2527_v23 = vpop.f32.mrb[78].mxu0 }
 0x248   : > { %v1781_v62 = vmul.f32 0.1, %v1745_v30  ;;  %v1748_v38 = vadd.f32 %v2527_v23, %v3637_v53  ;;  %v1739_v48 = vpop.f32.mrb[79].mxu0  ;;  %2533 = vmatpush3.bf16.xpose.msra.mxu1 %v1801_v12  ;;  %vm1765_vm13 = vcmp.gt.f32.partialorder %v1745_v30, 0.0 }
 0x249   : > { %v1779_v0 = vmul.f32 0.1, %v1737_v21  ;;  %v1740_v13 = vadd.f32 %v1739_v48, %v3630_v2  ;;  %2534 = vmatprep.subr.bf16.mxu1 %v3061_v60  ;;  %vm1763_vm14 = vcmp.gt.f32.partialorder %v1737_v21, 0.0  ;;  %v2777_v2 = vld [vmem:[#allocation9] sm:$0xff]  }
 0x24a   : > { %vm1766_vm15 = vcmp.gt.f32.partialorder %v1748_v38, 0.0  ;;  %v1782_v44 = vmul.f32 0.1, %v1748_v38  ;;  %v1797_v24 = vsel %vm1765_vm13, %v1745_v30, %v1781_v62 }
 0x24b   : > { %vm1764_vm0 = vcmp.gt.f32.partialorder %v1740_v13, 0.0  ;;  %v1780_v22 = vmul.f32 0.1, %v1740_v13  ;;  %v1795_v1 = vsel %vm1763_vm14, %v1737_v21, %v1779_v0 }
 0x24c   : > { %v1798_v28 = vsel %vm1766_vm15, %v1748_v38, %v1782_v44 }
 0x24d   : > { %v1806_v29 = vpack.c.bf16 %v1798_v28, %v1797_v24  ;;  %v1796_v53 = vsel %vm1764_vm0, %v1740_v13, %v1780_v22 }
 0x24e   : > { %v1805_v47 = vpack.c.bf16 %v1796_v53, %v1795_v1 }
 0x250   : > { %2535 = vmatpush3.bf16.xpose.msra.mxu1 %v1802_v56 }
 0x251   : > { %2536 = vmatprep.subr.bf16.mxu1 %v3061_v60 }
 0x258   : > { %2537 = vmatpush3.bf16.xpose.msra.mxu1 %v1803_v41 }
 0x259   : > { %2538 = vmatprep.subr.bf16.mxu1 %v3061_v60 }
 0x260   : > { %2539 = vmatpush3.bf16.xpose.msra.mxu1 %v1804_v49 }
 0x261   : > { %2540 = vmatprep.subr.bf16.mxu1 %v3061_v60 }
 0x268   : > { %2541 = vmatpush3.bf16.xpose.msra.mxu1 %v1805_v47 }
 0x269   : > { %2542 = vmatprep.subr.bf16.mxu1 %v3061_v60 }
 0x270   : > { %2543 = vmatpush3.bf16.xpose.msra.mxu1 %v1806_v29 }
 0x271   : > { %v1814_v32 = vpop.permute.xlu0 %1813 }
 0x275   : > { %v1819_v60 = vpop.permute.xlu0 %1818 }
 0x277   : > { %2545 = vmatmul.mubr.bf16.vlgmr.msra.gmra.mrb[64].mxu1 %v2777_v2 }
 0x34a   : > { %v1861_v54 = vpop.f32.mrb[64].mxu1 }
 0x34b   : > { %v1862_v25 = vadd.f32 %v1861_v54, %v1814_v32  ;;  %v2546_v33 = vpop.f32.mrb[65].mxu1 }
 0x34c   : > { %v1864_v6 = vpop.f32.mrb[66].mxu1 }
 0x34d   : > { %1868 = vst [vmem:[%s312_s14] sm:$0xff] %v1862_v25  ;;  %v1865_v34 = vadd.f32 %v1864_v6, %v1819_v60  ;;  %v2547_v36 = vpop.f32.mrb[67].mxu1 }
 0x34f   : > { %1869 = vst [vmem:[%s312_s14 + $0x8] sm:$0x7f] %v1865_v34 }
 0x350   : > { %2933 = shalt.err (!%p2930_p5)
}
 0x351   : > { %s2934_s8 = scalar_lea.hbm %s3669_s25, 256  ;;  %s2938_s18 = scalar_lea.hbm %s3779_s9, 1024 }
 0x352   : > { %p2935_p8 = scmp.ne.s32.totalorder %s3669_s25, %s2934_s8  ;;  %p2939_p7 = scmp.lt.u32.totalorder %s3669_s25, %s3779_s9 }
 0x353   : > { %p2940_p9 = scmp.lt.u32.totalorder %s2938_s18, %s2934_s8  ;;  %p2942_p3 = scmp.lt.u32.totalorder %s2934_s8, %s3669_s25 }
 0x354   : > { %p2936_p12 = pnand %p2935_p8, %p3780_p1 }
 0x355   : > { %p2941_p0 = por %p2940_p9, %p2939_p7 }
 0x356   : > { %p2937_p2 = pneg %p2936_p12 }
 0x357   : > { %p2943_p4 = por %p2942_p3, %p2941_p0 }
 0x359   : > { %p2944_p6 = pnand %p2943_p4, %p2937_p2 }
 0x35b   : > { %2947 = shalt.err (!%p2944_p6)
}
 0x35c   : > { %s3065_s11 = smov 128   ;;  %s3066_s21 = smov 256  }
 0x35d   : > { %s3067_s24 = smov 8  }
 0x35e   : > { %2569 = dma.vmem_to_hbm [thread:$0]  (%p3780_p1), %s3664_s5, 256, %s3669_s25, %s3671_s30, %s3065_s11, %s3066_s21, %s3067_s24  }
 0x35f PF: > { %s3781_s2 = sld [smem:[#allocation17_spill]]  ;;  %s3782_s6 = sld [smem:[#allocation21_spill]] }
 0x360   : > { %p2601_p13 = scmp.ge.s32.totalorder %s3050_s28, 2 }
 0x365   : > { %s1900_s7 = sand.u32 1, %s3781_s2   ;;  %p3783_p10 = scmp.ne.s32.totalorder %s3782_s6, 0 }
 0x366   : > { %s1901_s10 = scalar_lea.sflag [#allocation5], %s1900_s7 }
 0x367   : > { %p2589_p11 = pnand %p2601_p13, %p3783_p10 }
 0x369   : > { %3005 = dma.done.wait (!%p2589_p11), %s1901_s10, 256  }
 0x36a   : > { %3007 = vsyncadd (!%p2589_p11), %s1901_s10, 4294967040  ;;  %s23_s28 = sadd.s32 1, %s3050_s28   ;;  %s3784_s18 = sld [smem:[#allocation18_spill]] }
 0x36b   : > { %p20_p5 = scmp.ge.s32.totalorder %s23_s28, 6   ;;  %s3785_s19 = smov %s3018_s20 }
 0x36c   : > { %s3786_s20 = smov %s3305_s12  ;;  %s3787_s21 = smov %s3026_s22 }
 0x36d   : > { %s3788_s22 = smov %s3030_s23  ;;  %s3789_s23 = smov %s3302_s16 }
 0x36e   : > { %s3790_s24 = smov %s3042_s26  ;;  %s3791_s25 = smov %s3046_s27 }
 0x36f   : > { %s3792_s26 = smov %s3795_s17  ;;  %s3793_s27 = smov %s3799_s1 }
 0x370   :  { %22 = sbr.rel (!%p20_p5) target bundleno = 15 (0xf), region = 104 }
 0x377   :  { %1906 = vsyncpa [#allocation4], 1 }
 0x378   :  { %1908 = vsyncpa [#allocation4 + $0x1], 1 }
 0x379   :  { %1909 = vsyncpa [#allocation7], 1 }
 0x37a   :  { %1910 = vsyncpa [#allocation10], 1 }
 0x37b   :  { %1911 = vsyncpa [#allocation5], 1 }
 0x37c   :  { %1913 = vsyncpa [#allocation5 + $0x1], 1 }

</bundles_post_ra>
